<compile_context>
chip_gen: v7x
topology: tpu7x:2x2x1
jax: 0.10.0
libtpu: 0.0.40
codegen_flags: <defaults>
</compile_context>

<pallas_src>
import math

import jax
import jax.numpy as jnp
from jax.experimental import pallas as pl
from jax.experimental.pallas import tpu as pltpu

# Small, module-consistent shapes.
B, S, DIN, E = 2, 8, 16, 32
H = E // 2                      # GRU hidden size per direction
H2, H3, H6 = 2 * H, 3 * H, 6 * H


def multitoken_attention_kernel(x_ref, lens_ref, emb_ref, ih_ref, hh_ref,
                                att_ref, out_ref):
    lens = lens_ref[...]                        # (B, 1) int32 — original lengths
    lens_nz = jnp.maximum(lens, 1)              # sequence_lengths.clamp(min=1)
    idx = jax.lax.broadcasted_iota(jnp.int32, (B, S), 1)
    mask_orig = (idx < lens).astype(jnp.float32)    # attention mask (orig lens)

    # ---- unpack the 4 packed parameter slabs ----
    emb = emb_ref[...]
    w_emb, b_emb = emb[0:DIN, :], emb[DIN:DIN + 1, :]      # (DIN,E), (1,E)
    ih = ih_ref[...]
    w_ih, b_ih = ih[0:E, :], ih[E:E + 1, :]                # (E,6H): [fwd 3H | bwd 3H]
    hh = hh_ref[...]
    w_hh, b_hh = hh[0:H2, :], hh[H2:H2 + 1, :]             # block-diag (2H,6H)
    att_w = att_ref[...]                                   # (1, E)
    att_f, att_b = att_w[:, 0:H], att_w[:, H:E]

    # ---- hoisted batched projections (2 matmuls instead of 3*S tiny ones) ----
    x2 = x_ref[...]                                                        # (S*B, DIN)
    xe = jnp.dot(x2, w_emb, preferred_element_type=jnp.float32) + b_emb    # (S*B, E)
    gx = jnp.dot(xe, w_ih, preferred_element_type=jnp.float32) + b_ih      # (S*B, 6H)

    # ---- fused bidirectional GRU recurrence: S steps, one matmul per step ----
    h_cat = jnp.zeros((B, H2), jnp.float32)        # [hf | hb]
    logits = jnp.zeros((B, S), jnp.float32)        # accumulated attention logits
    for s in range(S):
        tb = S - 1 - s                             # time index of backward dir
        gh = jnp.dot(h_cat, w_hh, preferred_element_type=jnp.float32) + b_hh
        ghf, ghb = gh[:, 0:H3], gh[:, H3:H6]
        gxf = gx[s * B:(s + 1) * B, 0:H3]          # fwd input gates @ time s
        gxb = gx[tb * B:(tb + 1) * B, H3:H6]       # bwd input gates @ time tb
        hf_prev, hb_prev = h_cat[:, 0:H], h_cat[:, H:H2]

        # forward GRU cell (gate order r, z, n)
        rz_f = jax.nn.sigmoid(gxf[:, 0:H2] + ghf[:, 0:H2])
        rf, zf = rz_f[:, 0:H], rz_f[:, H:H2]
        nf = jnp.tanh(gxf[:, H2:H3] + rf * ghf[:, H2:H3])
        hf_new = (1.0 - zf) * nf + zf * hf_prev
        # backward GRU cell
        rz_b = jax.nn.sigmoid(gxb[:, 0:H2] + ghb[:, 0:H2])
        rb, zb = rz_b[:, 0:H], rz_b[:, H:H2]
        nb = jnp.tanh(gxb[:, H2:H3] + rb * ghb[:, H2:H3])
        hb_new = (1.0 - zb) * nb + zb * hb_prev

        valid_f = s < lens_nz                      # (B, 1) packed-seq validity
        valid_b = tb < lens_nz

        # attention logit contributions; padded GRU outputs are exactly zero
        lf = jnp.where(valid_f,
                       jnp.sum(hf_new * att_f, axis=-1, keepdims=True), 0.0)
        lb = jnp.where(valid_b,
                       jnp.sum(hb_new * att_b, axis=-1, keepdims=True), 0.0)
        logits = logits + jnp.where(idx == s, lf, 0.0) + jnp.where(idx == tb, lb, 0.0)

        # packed-sequence semantics: state only advances on valid steps
        hf_upd = jnp.where(valid_f, hf_new, hf_prev)
        hb_upd = jnp.where(valid_b, hb_new, hb_prev)
        h_cat = jnp.concatenate([hf_upd, hb_upd], axis=-1)

    # ---- MaskedAttention (global-max shift, matching the reference) ----
    scores = jnp.exp(logits - jnp.max(logits)) * mask_orig        # (B, S)
    att_sums = jnp.maximum(jnp.sum(scores, axis=1, keepdims=True), 1e-5)
    scores = scores / att_sums

    # weighted sum of the embedded tokens — all operands live in registers.
    rep = jnp.zeros((B, E), jnp.float32)
    for t in range(S):
        rep = rep + xe[t * B:(t + 1) * B, :] * scores[:, t:t + 1]
    out_ref[...] = rep


def multitoken_attention_embed(x, sequence_lengths, params):
    (w_emb, b_emb, w_ih_f, w_hh_f, b_ih_f, b_hh_f,
     w_ih_b, w_hh_b, b_ih_b, b_hh_b, att_w) = params

    # --- host-side parameter packing: 13 tensors -> 4 VMEM inputs ---
    emb_pack = jnp.concatenate([w_emb, b_emb], axis=0)                  # (DIN+1, E)
    ih_pack = jnp.concatenate(
        [jnp.concatenate([w_ih_f, w_ih_b], axis=1),
         jnp.concatenate([b_ih_f, b_ih_b], axis=1)], axis=0)            # (E+1, 6H)
    zeros = jnp.zeros((H, H3), jnp.float32)
    w_hh_big = jnp.concatenate(
        [jnp.concatenate([w_hh_f, zeros], axis=1),                      # rows for hf
         jnp.concatenate([zeros, w_hh_b], axis=1)], axis=0)             # rows for hb
    b_hh_big = jnp.concatenate([b_hh_f, b_hh_b], axis=1)                # (1, 6H)
    hh_pack = jnp.concatenate([w_hh_big, b_hh_big], axis=0)             # (2H+1, 6H)

    # time-major tokens: row s*B + b holds token (batch b, time s)
    x_tm = jnp.transpose(x, (1, 0, 2)).reshape(S * B, DIN)
    lens2d = sequence_lengths.reshape(B, 1).astype(jnp.int32)

    vmem = pl.BlockSpec(memory_space=pltpu.MemorySpace.VMEM)
    return pl.pallas_call(
        multitoken_attention_kernel,
        out_shape=jax.ShapeDtypeStruct((B, E), jnp.float32),
        in_specs=[vmem] * 6,
        out_specs=vmem,
    )(x_tm, lens2d, emb_pack, ih_pack, hh_pack, att_w)


# ---------------- pure-JAX reference (for numerical check) ----------------
def reference(x, lens, params):
    (w_emb, b_emb, w_ih_f, w_hh_f, b_ih_f, b_hh_f,
     w_ih_b, w_hh_b, b_ih_b, b_hh_b, att_w) = params
    xe = jnp.einsum("bsd,de->bse", x, w_emb) + b_emb[0]
    lens_nz = jnp.maximum(lens, 1)

    def cell(gx, h, w_hh, b_hh):
        gh = h @ w_hh + b_hh
        r = jax.nn.sigmoid(gx[:, :H] + gh[:, :H])
        z = jax.nn.sigmoid(gx[:, H:2 * H] + gh[:, H:2 * H])
        n = jnp.tanh(gx[:, 2 * H:] + r * gh[:, 2 * H:])
        return (1.0 - z) * n + z * h

    hf_list, hb_list = [], [None] * S
    hf = jnp.zeros((B, H)); hb = jnp.zeros((B, H))
    for t in range(S):
        gx = xe[:, t, :] @ w_ih_f + b_ih_f
        hn = cell(gx, hf, w_hh_f, b_hh_f)
        valid = (t < lens_nz)[:, None]
        hf_list.append(jnp.where(valid, hn, 0.0))
        hf = jnp.where(valid, hn, hf)
    for t in range(S - 1, -1, -1):
        gx = xe[:, t, :] @ w_ih_b + b_ih_b
        hn = cell(gx, hb, w_hh_b, b_hh_b)
        valid = (t < lens_nz)[:, None]
        hb_list[t] = jnp.where(valid, hn, 0.0)
        hb = jnp.where(valid, hn, hb)
    h = jnp.concatenate([jnp.stack(hf_list, 1), jnp.stack(hb_list, 1)], -1)
    logits = h @ att_w[0]
    scores = jnp.exp(logits - logits.max())
    mask = (jnp.arange(S)[None, :] < lens[:, None]).astype(jnp.float32)
    masked = scores * mask
    sums = jnp.maximum(masked.sum(1, keepdims=True), 1e-5)
    scores = masked / sums
    return (xe * scores[:, :, None]).sum(1)


if __name__ == "__main__":
    key = jax.random.PRNGKey(0)
    ks = jax.random.split(key, 13)
    bound = 1.0 / math.sqrt(H)   # PyTorch GRU default init bound

    def u(k, shape, lo, hi):
        return jax.random.uniform(k, shape, jnp.float32, lo, hi)

    params = (
        u(ks[0], (DIN, E), -0.1, 0.1),         # embed_net weight  (DIN -> E)
        u(ks[1], (1, E), -0.1, 0.1),           # embed_net bias
        u(ks[2], (E, 3 * H), -bound, bound),   # GRU fwd W_ih^T  (gate order r,z,n)
        u(ks[3], (H, 3 * H), -bound, bound),   # GRU fwd W_hh^T
        u(ks[4], (1, 3 * H), -bound, bound),   # GRU fwd b_ih
        u(ks[5], (1, 3 * H), -bound, bound),   # GRU fwd b_hh
        u(ks[6], (E, 3 * H), -bound, bound),   # GRU bwd W_ih^T
        u(ks[7], (H, 3 * H), -bound, bound),   # GRU bwd W_hh^T
        u(ks[8], (1, 3 * H), -bound, bound),   # GRU bwd b_ih
        u(ks[9], (1, 3 * H), -bound, bound),   # GRU bwd b_hh
        u(ks[10], (1, E), -0.1, 0.1),          # MaskedAttention.attention_weights
    )
    x = jax.random.normal(ks[11], (B, S, DIN), jnp.float32)
    seq_lens = jnp.array([S, 3], jnp.int32)    # max length equals S (same implicit
                                               # assumption as the torch code)

    out = jax.block_until_ready(multitoken_attention_embed(x, seq_lens, params))
    ref = reference(x, seq_lens, params)
    assert out.shape == (B, E)
    assert jnp.allclose(out, ref, atol=1e-4, rtol=1e-4), (out, ref)
    print("KERNEL_OK")
</pallas_src>

<mosaic_0001>
module attributes {stable_mosaic.version = 11 : i64} {
  func.func @multitoken_attention_kernel(%arg0: memref<16x16xf32, #tpu.memory_space<vmem>>, %arg1: memref<2x1xi32, #tpu.memory_space<vmem>>, %arg2: memref<17x32xf32, #tpu.memory_space<vmem>>, %arg3: memref<33x96xf32, #tpu.memory_space<vmem>>, %arg4: memref<33x96xf32, #tpu.memory_space<vmem>>, %arg5: memref<1x32xf32, #tpu.memory_space<vmem>>, %arg6: memref<2x32xf32, #tpu.memory_space<vmem>>) attributes {dimension_semantics = [], scalar_prefetch = 0 : i64, scratch_operands = 0 : i64, tpu.core_type = #tpu.core_type<tc>} {
    %c0 = arith.constant 0 : index
    %c0_0 = arith.constant 0 : index
    %0 = vector.load %arg1[%c0, %c0_0] : memref<2x1xi32, #tpu.memory_space<vmem>>, vector<2x1xi32>
    %c1_i32 = arith.constant 1 : i32
    %1 = vector.broadcast %c1_i32 : i32 to vector<2x1xi32>
    %2 = arith.maxsi %0, %1 : vector<2x1xi32>
    %3 = tpu.iota {dimensions = array<i32: 1>} : vector<2x8xi32>
    %4 = vector.broadcast %0 : vector<2x1xi32> to vector<2x8xi32>
    %5 = arith.cmpi slt, %3, %4 : vector<2x8xi32>
    %6 = arith.extui %5 : vector<2x8xi1> to vector<2x8xi32>
    %7 = arith.sitofp %6 : vector<2x8xi32> to vector<2x8xf32>
    %c0_1 = arith.constant 0 : index
    %c0_2 = arith.constant 0 : index
    %8 = vector.load %arg2[%c0_1, %c0_2] : memref<17x32xf32, #tpu.memory_space<vmem>>, vector<17x32xf32>
    %9 = vector.extract_strided_slice %8 {offsets = [0, 0], sizes = [16, 32], strides = [1, 1]} : vector<17x32xf32> to vector<16x32xf32>
    %10 = vector.extract_strided_slice %8 {offsets = [16, 0], sizes = [1, 32], strides = [1, 1]} : vector<17x32xf32> to vector<1x32xf32>
    %c0_3 = arith.constant 0 : index
    %c0_4 = arith.constant 0 : index
    %11 = vector.load %arg3[%c0_3, %c0_4] : memref<33x96xf32, #tpu.memory_space<vmem>>, vector<33x96xf32>
    %12 = vector.extract_strided_slice %11 {offsets = [0, 0], sizes = [32, 96], strides = [1, 1]} : vector<33x96xf32> to vector<32x96xf32>
    %13 = vector.extract_strided_slice %11 {offsets = [32, 0], sizes = [1, 96], strides = [1, 1]} : vector<33x96xf32> to vector<1x96xf32>
    %c0_5 = arith.constant 0 : index
    %c0_6 = arith.constant 0 : index
    %14 = vector.load %arg4[%c0_5, %c0_6] : memref<33x96xf32, #tpu.memory_space<vmem>>, vector<33x96xf32>
    %15 = vector.extract_strided_slice %14 {offsets = [0, 0], sizes = [32, 96], strides = [1, 1]} : vector<33x96xf32> to vector<32x96xf32>
    %16 = vector.extract_strided_slice %14 {offsets = [32, 0], sizes = [1, 96], strides = [1, 1]} : vector<33x96xf32> to vector<1x96xf32>
    %c0_7 = arith.constant 0 : index
    %c0_8 = arith.constant 0 : index
    %17 = vector.load %arg5[%c0_7, %c0_8] : memref<1x32xf32, #tpu.memory_space<vmem>>, vector<1x32xf32>
    %18 = vector.extract_strided_slice %17 {offsets = [0, 0], sizes = [1, 16], strides = [1, 1]} : vector<1x32xf32> to vector<1x16xf32>
    %19 = vector.extract_strided_slice %17 {offsets = [0, 16], sizes = [1, 16], strides = [1, 1]} : vector<1x32xf32> to vector<1x16xf32>
    %c0_9 = arith.constant 0 : index
    %c0_10 = arith.constant 0 : index
    %20 = vector.load %arg0[%c0_9, %c0_10] : memref<16x16xf32, #tpu.memory_space<vmem>>, vector<16x16xf32>
    %cst = arith.constant dense<0.000000e+00> : vector<16x32xf32>
    %21 = tpu.matmul %20, %9, %cst {dimension_numbers = #tpu.dot_dimension_numbers<[1], [0], [0], [1], [0, 0, 1, 1], [], []>} : vector<16x16xf32>, vector<16x32xf32>, vector<16x32xf32> -> vector<16x32xf32>
    %22 = vector.broadcast %10 : vector<1x32xf32> to vector<16x32xf32>
    %23 = arith.addf %21, %22 : vector<16x32xf32>
    %cst_11 = arith.constant dense<0.000000e+00> : vector<16x96xf32>
    %24 = tpu.matmul %23, %12, %cst_11 {dimension_numbers = #tpu.dot_dimension_numbers<[1], [0], [0], [1], [0, 0, 1, 1], [], []>} : vector<16x32xf32>, vector<32x96xf32>, vector<16x96xf32> -> vector<16x96xf32>
    %25 = vector.broadcast %13 : vector<1x96xf32> to vector<16x96xf32>
    %26 = arith.addf %24, %25 : vector<16x96xf32>
    %cst_12 = arith.constant 0.000000e+00 : f32
    %27 = vector.broadcast %cst_12 : f32 to vector<2x32xf32>
    %cst_13 = arith.constant 0.000000e+00 : f32
    %28 = vector.broadcast %cst_13 : f32 to vector<2x8xf32>
    %cst_14 = arith.constant dense<0.000000e+00> : vector<2x96xf32>
    %29 = tpu.matmul %27, %15, %cst_14 {dimension_numbers = #tpu.dot_dimension_numbers<[1], [0], [0], [1], [0, 0, 1, 1], [], []>} : vector<2x32xf32>, vector<32x96xf32>, vector<2x96xf32> -> vector<2x96xf32>
    %30 = vector.broadcast %16 : vector<1x96xf32> to vector<2x96xf32>
    %31 = arith.addf %29, %30 : vector<2x96xf32>
    %32 = vector.extract_strided_slice %31 {offsets = [0, 0], sizes = [2, 48], strides = [1, 1]} : vector<2x96xf32> to vector<2x48xf32>
    %33 = vector.extract_strided_slice %31 {offsets = [0, 48], sizes = [2, 48], strides = [1, 1]} : vector<2x96xf32> to vector<2x48xf32>
    %34 = vector.extract_strided_slice %26 {offsets = [0, 0], sizes = [2, 48], strides = [1, 1]} : vector<16x96xf32> to vector<2x48xf32>
    %35 = vector.extract_strided_slice %26 {offsets = [14, 48], sizes = [2, 48], strides = [1, 1]} : vector<16x96xf32> to vector<2x48xf32>
    %36 = vector.extract_strided_slice %27 {offsets = [0, 0], sizes = [2, 16], strides = [1, 1]} : vector<2x32xf32> to vector<2x16xf32>
    %37 = vector.extract_strided_slice %27 {offsets = [0, 16], sizes = [2, 16], strides = [1, 1]} : vector<2x32xf32> to vector<2x16xf32>
    %38 = vector.extract_strided_slice %34 {offsets = [0, 0], sizes = [2, 32], strides = [1, 1]} : vector<2x48xf32> to vector<2x32xf32>
    %39 = vector.extract_strided_slice %32 {offsets = [0, 0], sizes = [2, 32], strides = [1, 1]} : vector<2x48xf32> to vector<2x32xf32>
    %40 = arith.addf %38, %39 : vector<2x32xf32>
    %41 = arith.negf %40 : vector<2x32xf32>
    %42 = math.exp %41 : vector<2x32xf32>
    %cst_15 = arith.constant 1.000000e+00 : f32
    %43 = vector.broadcast %cst_15 : f32 to vector<2x32xf32>
    %44 = arith.addf %43, %42 : vector<2x32xf32>
    %45 = arith.divf %43, %44 : vector<2x32xf32>
    %46 = vector.extract_strided_slice %45 {offsets = [0, 0], sizes = [2, 16], strides = [1, 1]} : vector<2x32xf32> to vector<2x16xf32>
    %47 = vector.extract_strided_slice %45 {offsets = [0, 16], sizes = [2, 16], strides = [1, 1]} : vector<2x32xf32> to vector<2x16xf32>
    %48 = vector.extract_strided_slice %34 {offsets = [0, 32], sizes = [2, 16], strides = [1, 1]} : vector<2x48xf32> to vector<2x16xf32>
    %49 = vector.extract_strided_slice %32 {offsets = [0, 32], sizes = [2, 16], strides = [1, 1]} : vector<2x48xf32> to vector<2x16xf32>
    %50 = arith.mulf %46, %49 : vector<2x16xf32>
    %51 = arith.addf %48, %50 : vector<2x16xf32>
    %52 = math.tanh %51 : vector<2x16xf32>
    %cst_16 = arith.constant 1.000000e+00 : f32
    %53 = vector.broadcast %cst_16 : f32 to vector<2x16xf32>
    %54 = arith.subf %53, %47 : vector<2x16xf32>
    %55 = arith.mulf %54, %52 : vector<2x16xf32>
    %56 = arith.mulf %47, %36 : vector<2x16xf32>
    %57 = arith.addf %55, %56 : vector<2x16xf32>
    %58 = vector.extract_strided_slice %35 {offsets = [0, 0], sizes = [2, 32], strides = [1, 1]} : vector<2x48xf32> to vector<2x32xf32>
    %59 = vector.extract_strided_slice %33 {offsets = [0, 0], sizes = [2, 32], strides = [1, 1]} : vector<2x48xf32> to vector<2x32xf32>
    %60 = arith.addf %58, %59 : vector<2x32xf32>
    %61 = arith.negf %60 : vector<2x32xf32>
    %62 = math.exp %61 : vector<2x32xf32>
    %cst_17 = arith.constant 1.000000e+00 : f32
    %63 = vector.broadcast %cst_17 : f32 to vector<2x32xf32>
    %64 = arith.addf %63, %62 : vector<2x32xf32>
    %65 = arith.divf %63, %64 : vector<2x32xf32>
    %66 = vector.extract_strided_slice %65 {offsets = [0, 0], sizes = [2, 16], strides = [1, 1]} : vector<2x32xf32> to vector<2x16xf32>
    %67 = vector.extract_strided_slice %65 {offsets = [0, 16], sizes = [2, 16], strides = [1, 1]} : vector<2x32xf32> to vector<2x16xf32>
    %68 = vector.extract_strided_slice %35 {offsets = [0, 32], sizes = [2, 16], strides = [1, 1]} : vector<2x48xf32> to vector<2x16xf32>
    %69 = vector.extract_strided_slice %33 {offsets = [0, 32], sizes = [2, 16], strides = [1, 1]} : vector<2x48xf32> to vector<2x16xf32>
    %70 = arith.mulf %66, %69 : vector<2x16xf32>
    %71 = arith.addf %68, %70 : vector<2x16xf32>
    %72 = math.tanh %71 : vector<2x16xf32>
    %cst_18 = arith.constant 1.000000e+00 : f32
    %73 = vector.broadcast %cst_18 : f32 to vector<2x16xf32>
    %74 = arith.subf %73, %67 : vector<2x16xf32>
    %75 = arith.mulf %74, %72 : vector<2x16xf32>
    %76 = arith.mulf %67, %37 : vector<2x16xf32>
    %77 = arith.addf %75, %76 : vector<2x16xf32>
    %c0_i32 = arith.constant 0 : i32
    %78 = vector.broadcast %c0_i32 : i32 to vector<2x1xi32>
    %79 = arith.cmpi sgt, %2, %78 : vector<2x1xi32>
    %c7_i32 = arith.constant 7 : i32
    %80 = vector.broadcast %c7_i32 : i32 to vector<2x1xi32>
    %81 = arith.cmpi sgt, %2, %80 : vector<2x1xi32>
    %82 = vector.broadcast %18 : vector<1x16xf32> to vector<2x16xf32>
    %83 = arith.mulf %57, %82 : vector<2x16xf32>
    %cst_19 = arith.constant dense<0.000000e+00> : vector<2xf32>
    %84 = vector.multi_reduction <add>, %83, %cst_19 [1] : vector<2x16xf32> to vector<2xf32>
    %85 = vector.shape_cast %84 : vector<2xf32> to vector<2x1xf32>
    %cst_20 = arith.constant 0.000000e+00 : f32
    %86 = vector.broadcast %cst_20 : f32 to vector<2x1xf32>
    %87 = arith.select %79, %85, %86 : vector<2x1xi1>, vector<2x1xf32>
    %88 = vector.broadcast %19 : vector<1x16xf32> to vector<2x16xf32>
    %89 = arith.mulf %77, %88 : vector<2x16xf32>
    %cst_21 = arith.constant dense<0.000000e+00> : vector<2xf32>
    %90 = vector.multi_reduction <add>, %89, %cst_21 [1] : vector<2x16xf32> to vector<2xf32>
    %91 = vector.shape_cast %90 : vector<2xf32> to vector<2x1xf32>
    %cst_22 = arith.constant 0.000000e+00 : f32
    %92 = vector.broadcast %cst_22 : f32 to vector<2x1xf32>
    %93 = arith.select %81, %91, %92 : vector<2x1xi1>, vector<2x1xf32>
    %c0_i32_23 = arith.constant 0 : i32
    %94 = vector.broadcast %c0_i32_23 : i32 to vector<2x8xi32>
    %95 = arith.cmpi eq, %3, %94 : vector<2x8xi32>
    %cst_24 = arith.constant 0.000000e+00 : f32
    %96 = vector.shape_cast %87 : vector<2x1xf32> to vector<2x1xf32>
    %97 = vector.broadcast %96 : vector<2x1xf32> to vector<2x8xf32>
    %98 = vector.broadcast %cst_24 : f32 to vector<2x8xf32>
    %99 = arith.select %95, %97, %98 : vector<2x8xi1>, vector<2x8xf32>
    %100 = arith.addf %28, %99 : vector<2x8xf32>
    %c7_i32_25 = arith.constant 7 : i32
    %101 = vector.broadcast %c7_i32_25 : i32 to vector<2x8xi32>
    %102 = arith.cmpi eq, %3, %101 : vector<2x8xi32>
    %cst_26 = arith.constant 0.000000e+00 : f32
    %103 = vector.shape_cast %93 : vector<2x1xf32> to vector<2x1xf32>
    %104 = vector.broadcast %103 : vector<2x1xf32> to vector<2x8xf32>
    %105 = vector.broadcast %cst_26 : f32 to vector<2x8xf32>
    %106 = arith.select %102, %104, %105 : vector<2x8xi1>, vector<2x8xf32>
    %107 = arith.addf %100, %106 : vector<2x8xf32>
    %108 = vector.shape_cast %79 : vector<2x1xi1> to vector<2x1xi1>
    %109 = vector.broadcast %108 : vector<2x1xi1> to vector<2x16xi1>
    %110 = arith.select %109, %57, %36 : vector<2x16xi1>, vector<2x16xf32>
    %111 = vector.shape_cast %81 : vector<2x1xi1> to vector<2x1xi1>
    %112 = vector.broadcast %111 : vector<2x1xi1> to vector<2x16xi1>
    %113 = arith.select %112, %77, %37 : vector<2x16xi1>, vector<2x16xf32>
    %114 = tpu.concatenate %110, %113 in 1 : vector<2x16xf32>, vector<2x16xf32> -> vector<2x32xf32>
    %cst_27 = arith.constant dense<0.000000e+00> : vector<2x96xf32>
    %115 = tpu.matmul %114, %15, %cst_27 {dimension_numbers = #tpu.dot_dimension_numbers<[1], [0], [0], [1], [0, 0, 1, 1], [], []>} : vector<2x32xf32>, vector<32x96xf32>, vector<2x96xf32> -> vector<2x96xf32>
    %116 = vector.broadcast %16 : vector<1x96xf32> to vector<2x96xf32>
    %117 = arith.addf %115, %116 : vector<2x96xf32>
    %118 = vector.extract_strided_slice %117 {offsets = [0, 0], sizes = [2, 48], strides = [1, 1]} : vector<2x96xf32> to vector<2x48xf32>
    %119 = vector.extract_strided_slice %117 {offsets = [0, 48], sizes = [2, 48], strides = [1, 1]} : vector<2x96xf32> to vector<2x48xf32>
    %120 = vector.extract_strided_slice %26 {offsets = [2, 0], sizes = [2, 48], strides = [1, 1]} : vector<16x96xf32> to vector<2x48xf32>
    %121 = vector.extract_strided_slice %26 {offsets = [12, 48], sizes = [2, 48], strides = [1, 1]} : vector<16x96xf32> to vector<2x48xf32>
    %122 = vector.extract_strided_slice %114 {offsets = [0, 0], sizes = [2, 16], strides = [1, 1]} : vector<2x32xf32> to vector<2x16xf32>
    %123 = vector.extract_strided_slice %114 {offsets = [0, 16], sizes = [2, 16], strides = [1, 1]} : vector<2x32xf32> to vector<2x16xf32>
    %124 = vector.extract_strided_slice %120 {offsets = [0, 0], sizes = [2, 32], strides = [1, 1]} : vector<2x48xf32> to vector<2x32xf32>
    %125 = vector.extract_strided_slice %118 {offsets = [0, 0], sizes = [2, 32], strides = [1, 1]} : vector<2x48xf32> to vector<2x32xf32>
    %126 = arith.addf %124, %125 : vector<2x32xf32>
    %127 = arith.negf %126 : vector<2x32xf32>
    %128 = math.exp %127 : vector<2x32xf32>
    %cst_28 = arith.constant 1.000000e+00 : f32
    %129 = vector.broadcast %cst_28 : f32 to vector<2x32xf32>
    %130 = arith.addf %129, %128 : vector<2x32xf32>
    %131 = arith.divf %129, %130 : vector<2x32xf32>
    %132 = vector.extract_strided_slice %131 {offsets = [0, 0], sizes = [2, 16], strides = [1, 1]} : vector<2x32xf32> to vector<2x16xf32>
    %133 = vector.extract_strided_slice %131 {offsets = [0, 16], sizes = [2, 16], strides = [1, 1]} : vector<2x32xf32> to vector<2x16xf32>
    %134 = vector.extract_strided_slice %120 {offsets = [0, 32], sizes = [2, 16], strides = [1, 1]} : vector<2x48xf32> to vector<2x16xf32>
    %135 = vector.extract_strided_slice %118 {offsets = [0, 32], sizes = [2, 16], strides = [1, 1]} : vector<2x48xf32> to vector<2x16xf32>
    %136 = arith.mulf %132, %135 : vector<2x16xf32>
    %137 = arith.addf %134, %136 : vector<2x16xf32>
    %138 = math.tanh %137 : vector<2x16xf32>
    %cst_29 = arith.constant 1.000000e+00 : f32
    %139 = vector.broadcast %cst_29 : f32 to vector<2x16xf32>
    %140 = arith.subf %139, %133 : vector<2x16xf32>
    %141 = arith.mulf %140, %138 : vector<2x16xf32>
    %142 = arith.mulf %133, %122 : vector<2x16xf32>
    %143 = arith.addf %141, %142 : vector<2x16xf32>
    %144 = vector.extract_strided_slice %121 {offsets = [0, 0], sizes = [2, 32], strides = [1, 1]} : vector<2x48xf32> to vector<2x32xf32>
    %145 = vector.extract_strided_slice %119 {offsets = [0, 0], sizes = [2, 32], strides = [1, 1]} : vector<2x48xf32> to vector<2x32xf32>
    %146 = arith.addf %144, %145 : vector<2x32xf32>
    %147 = arith.negf %146 : vector<2x32xf32>
    %148 = math.exp %147 : vector<2x32xf32>
    %cst_30 = arith.constant 1.000000e+00 : f32
    %149 = vector.broadcast %cst_30 : f32 to vector<2x32xf32>
    %150 = arith.addf %149, %148 : vector<2x32xf32>
    %151 = arith.divf %149, %150 : vector<2x32xf32>
    %152 = vector.extract_strided_slice %151 {offsets = [0, 0], sizes = [2, 16], strides = [1, 1]} : vector<2x32xf32> to vector<2x16xf32>
    %153 = vector.extract_strided_slice %151 {offsets = [0, 16], sizes = [2, 16], strides = [1, 1]} : vector<2x32xf32> to vector<2x16xf32>
    %154 = vector.extract_strided_slice %121 {offsets = [0, 32], sizes = [2, 16], strides = [1, 1]} : vector<2x48xf32> to vector<2x16xf32>
    %155 = vector.extract_strided_slice %119 {offsets = [0, 32], sizes = [2, 16], strides = [1, 1]} : vector<2x48xf32> to vector<2x16xf32>
    %156 = arith.mulf %152, %155 : vector<2x16xf32>
    %157 = arith.addf %154, %156 : vector<2x16xf32>
    %158 = math.tanh %157 : vector<2x16xf32>
    %cst_31 = arith.constant 1.000000e+00 : f32
    %159 = vector.broadcast %cst_31 : f32 to vector<2x16xf32>
    %160 = arith.subf %159, %153 : vector<2x16xf32>
    %161 = arith.mulf %160, %158 : vector<2x16xf32>
    %162 = arith.mulf %153, %123 : vector<2x16xf32>
    %163 = arith.addf %161, %162 : vector<2x16xf32>
    %c1_i32_32 = arith.constant 1 : i32
    %164 = vector.broadcast %c1_i32_32 : i32 to vector<2x1xi32>
    %165 = arith.cmpi sgt, %2, %164 : vector<2x1xi32>
    %c6_i32 = arith.constant 6 : i32
    %166 = vector.broadcast %c6_i32 : i32 to vector<2x1xi32>
    %167 = arith.cmpi sgt, %2, %166 : vector<2x1xi32>
    %168 = vector.broadcast %18 : vector<1x16xf32> to vector<2x16xf32>
    %169 = arith.mulf %143, %168 : vector<2x16xf32>
    %cst_33 = arith.constant dense<0.000000e+00> : vector<2xf32>
    %170 = vector.multi_reduction <add>, %169, %cst_33 [1] : vector<2x16xf32> to vector<2xf32>
    %171 = vector.shape_cast %170 : vector<2xf32> to vector<2x1xf32>
    %cst_34 = arith.constant 0.000000e+00 : f32
    %172 = vector.broadcast %cst_34 : f32 to vector<2x1xf32>
    %173 = arith.select %165, %171, %172 : vector<2x1xi1>, vector<2x1xf32>
    %174 = vector.broadcast %19 : vector<1x16xf32> to vector<2x16xf32>
    %175 = arith.mulf %163, %174 : vector<2x16xf32>
    %cst_35 = arith.constant dense<0.000000e+00> : vector<2xf32>
    %176 = vector.multi_reduction <add>, %175, %cst_35 [1] : vector<2x16xf32> to vector<2xf32>
    %177 = vector.shape_cast %176 : vector<2xf32> to vector<2x1xf32>
    %cst_36 = arith.constant 0.000000e+00 : f32
    %178 = vector.broadcast %cst_36 : f32 to vector<2x1xf32>
    %179 = arith.select %167, %177, %178 : vector<2x1xi1>, vector<2x1xf32>
    %c1_i32_37 = arith.constant 1 : i32
    %180 = vector.broadcast %c1_i32_37 : i32 to vector<2x8xi32>
    %181 = arith.cmpi eq, %3, %180 : vector<2x8xi32>
    %cst_38 = arith.constant 0.000000e+00 : f32
    %182 = vector.shape_cast %173 : vector<2x1xf32> to vector<2x1xf32>
    %183 = vector.broadcast %182 : vector<2x1xf32> to vector<2x8xf32>
    %184 = vector.broadcast %cst_38 : f32 to vector<2x8xf32>
    %185 = arith.select %181, %183, %184 : vector<2x8xi1>, vector<2x8xf32>
    %186 = arith.addf %107, %185 : vector<2x8xf32>
    %c6_i32_39 = arith.constant 6 : i32
    %187 = vector.broadcast %c6_i32_39 : i32 to vector<2x8xi32>
    %188 = arith.cmpi eq, %3, %187 : vector<2x8xi32>
    %cst_40 = arith.constant 0.000000e+00 : f32
    %189 = vector.shape_cast %179 : vector<2x1xf32> to vector<2x1xf32>
    %190 = vector.broadcast %189 : vector<2x1xf32> to vector<2x8xf32>
    %191 = vector.broadcast %cst_40 : f32 to vector<2x8xf32>
    %192 = arith.select %188, %190, %191 : vector<2x8xi1>, vector<2x8xf32>
    %193 = arith.addf %186, %192 : vector<2x8xf32>
    %194 = vector.shape_cast %165 : vector<2x1xi1> to vector<2x1xi1>
    %195 = vector.broadcast %194 : vector<2x1xi1> to vector<2x16xi1>
    %196 = arith.select %195, %143, %122 : vector<2x16xi1>, vector<2x16xf32>
    %197 = vector.shape_cast %167 : vector<2x1xi1> to vector<2x1xi1>
    %198 = vector.broadcast %197 : vector<2x1xi1> to vector<2x16xi1>
    %199 = arith.select %198, %163, %123 : vector<2x16xi1>, vector<2x16xf32>
    %200 = tpu.concatenate %196, %199 in 1 : vector<2x16xf32>, vector<2x16xf32> -> vector<2x32xf32>
    %cst_41 = arith.constant dense<0.000000e+00> : vector<2x96xf32>
    %201 = tpu.matmul %200, %15, %cst_41 {dimension_numbers = #tpu.dot_dimension_numbers<[1], [0], [0], [1], [0, 0, 1, 1], [], []>} : vector<2x32xf32>, vector<32x96xf32>, vector<2x96xf32> -> vector<2x96xf32>
    %202 = vector.broadcast %16 : vector<1x96xf32> to vector<2x96xf32>
    %203 = arith.addf %201, %202 : vector<2x96xf32>
    %204 = vector.extract_strided_slice %203 {offsets = [0, 0], sizes = [2, 48], strides = [1, 1]} : vector<2x96xf32> to vector<2x48xf32>
    %205 = vector.extract_strided_slice %203 {offsets = [0, 48], sizes = [2, 48], strides = [1, 1]} : vector<2x96xf32> to vector<2x48xf32>
    %206 = vector.extract_strided_slice %26 {offsets = [4, 0], sizes = [2, 48], strides = [1, 1]} : vector<16x96xf32> to vector<2x48xf32>
    %207 = vector.extract_strided_slice %26 {offsets = [10, 48], sizes = [2, 48], strides = [1, 1]} : vector<16x96xf32> to vector<2x48xf32>
    %208 = vector.extract_strided_slice %200 {offsets = [0, 0], sizes = [2, 16], strides = [1, 1]} : vector<2x32xf32> to vector<2x16xf32>
    %209 = vector.extract_strided_slice %200 {offsets = [0, 16], sizes = [2, 16], strides = [1, 1]} : vector<2x32xf32> to vector<2x16xf32>
    %210 = vector.extract_strided_slice %206 {offsets = [0, 0], sizes = [2, 32], strides = [1, 1]} : vector<2x48xf32> to vector<2x32xf32>
    %211 = vector.extract_strided_slice %204 {offsets = [0, 0], sizes = [2, 32], strides = [1, 1]} : vector<2x48xf32> to vector<2x32xf32>
    %212 = arith.addf %210, %211 : vector<2x32xf32>
    %213 = arith.negf %212 : vector<2x32xf32>
    %214 = math.exp %213 : vector<2x32xf32>
    %cst_42 = arith.constant 1.000000e+00 : f32
    %215 = vector.broadcast %cst_42 : f32 to vector<2x32xf32>
    %216 = arith.addf %215, %214 : vector<2x32xf32>
    %217 = arith.divf %215, %216 : vector<2x32xf32>
    %218 = vector.extract_strided_slice %217 {offsets = [0, 0], sizes = [2, 16], strides = [1, 1]} : vector<2x32xf32> to vector<2x16xf32>
    %219 = vector.extract_strided_slice %217 {offsets = [0, 16], sizes = [2, 16], strides = [1, 1]} : vector<2x32xf32> to vector<2x16xf32>
    %220 = vector.extract_strided_slice %206 {offsets = [0, 32], sizes = [2, 16], strides = [1, 1]} : vector<2x48xf32> to vector<2x16xf32>
    %221 = vector.extract_strided_slice %204 {offsets = [0, 32], sizes = [2, 16], strides = [1, 1]} : vector<2x48xf32> to vector<2x16xf32>
    %222 = arith.mulf %218, %221 : vector<2x16xf32>
    %223 = arith.addf %220, %222 : vector<2x16xf32>
    %224 = math.tanh %223 : vector<2x16xf32>
    %cst_43 = arith.constant 1.000000e+00 : f32
    %225 = vector.broadcast %cst_43 : f32 to vector<2x16xf32>
    %226 = arith.subf %225, %219 : vector<2x16xf32>
    %227 = arith.mulf %226, %224 : vector<2x16xf32>
    %228 = arith.mulf %219, %208 : vector<2x16xf32>
    %229 = arith.addf %227, %228 : vector<2x16xf32>
    %230 = vector.extract_strided_slice %207 {offsets = [0, 0], sizes = [2, 32], strides = [1, 1]} : vector<2x48xf32> to vector<2x32xf32>
    %231 = vector.extract_strided_slice %205 {offsets = [0, 0], sizes = [2, 32], strides = [1, 1]} : vector<2x48xf32> to vector<2x32xf32>
    %232 = arith.addf %230, %231 : vector<2x32xf32>
    %233 = arith.negf %232 : vector<2x32xf32>
    %234 = math.exp %233 : vector<2x32xf32>
    %cst_44 = arith.constant 1.000000e+00 : f32
    %235 = vector.broadcast %cst_44 : f32 to vector<2x32xf32>
    %236 = arith.addf %235, %234 : vector<2x32xf32>
    %237 = arith.divf %235, %236 : vector<2x32xf32>
    %238 = vector.extract_strided_slice %237 {offsets = [0, 0], sizes = [2, 16], strides = [1, 1]} : vector<2x32xf32> to vector<2x16xf32>
    %239 = vector.extract_strided_slice %237 {offsets = [0, 16], sizes = [2, 16], strides = [1, 1]} : vector<2x32xf32> to vector<2x16xf32>
    %240 = vector.extract_strided_slice %207 {offsets = [0, 32], sizes = [2, 16], strides = [1, 1]} : vector<2x48xf32> to vector<2x16xf32>
    %241 = vector.extract_strided_slice %205 {offsets = [0, 32], sizes = [2, 16], strides = [1, 1]} : vector<2x48xf32> to vector<2x16xf32>
    %242 = arith.mulf %238, %241 : vector<2x16xf32>
    %243 = arith.addf %240, %242 : vector<2x16xf32>
    %244 = math.tanh %243 : vector<2x16xf32>
    %cst_45 = arith.constant 1.000000e+00 : f32
    %245 = vector.broadcast %cst_45 : f32 to vector<2x16xf32>
    %246 = arith.subf %245, %239 : vector<2x16xf32>
    %247 = arith.mulf %246, %244 : vector<2x16xf32>
    %248 = arith.mulf %239, %209 : vector<2x16xf32>
    %249 = arith.addf %247, %248 : vector<2x16xf32>
    %c2_i32 = arith.constant 2 : i32
    %250 = vector.broadcast %c2_i32 : i32 to vector<2x1xi32>
    %251 = arith.cmpi sgt, %2, %250 : vector<2x1xi32>
    %c5_i32 = arith.constant 5 : i32
    %252 = vector.broadcast %c5_i32 : i32 to vector<2x1xi32>
    %253 = arith.cmpi sgt, %2, %252 : vector<2x1xi32>
    %254 = vector.broadcast %18 : vector<1x16xf32> to vector<2x16xf32>
    %255 = arith.mulf %229, %254 : vector<2x16xf32>
    %cst_46 = arith.constant dense<0.000000e+00> : vector<2xf32>
    %256 = vector.multi_reduction <add>, %255, %cst_46 [1] : vector<2x16xf32> to vector<2xf32>
    %257 = vector.shape_cast %256 : vector<2xf32> to vector<2x1xf32>
    %cst_47 = arith.constant 0.000000e+00 : f32
    %258 = vector.broadcast %cst_47 : f32 to vector<2x1xf32>
    %259 = arith.select %251, %257, %258 : vector<2x1xi1>, vector<2x1xf32>
    %260 = vector.broadcast %19 : vector<1x16xf32> to vector<2x16xf32>
    %261 = arith.mulf %249, %260 : vector<2x16xf32>
    %cst_48 = arith.constant dense<0.000000e+00> : vector<2xf32>
    %262 = vector.multi_reduction <add>, %261, %cst_48 [1] : vector<2x16xf32> to vector<2xf32>
    %263 = vector.shape_cast %262 : vector<2xf32> to vector<2x1xf32>
    %cst_49 = arith.constant 0.000000e+00 : f32
    %264 = vector.broadcast %cst_49 : f32 to vector<2x1xf32>
    %265 = arith.select %253, %263, %264 : vector<2x1xi1>, vector<2x1xf32>
    %c2_i32_50 = arith.constant 2 : i32
    %266 = vector.broadcast %c2_i32_50 : i32 to vector<2x8xi32>
    %267 = arith.cmpi eq, %3, %266 : vector<2x8xi32>
    %cst_51 = arith.constant 0.000000e+00 : f32
    %268 = vector.shape_cast %259 : vector<2x1xf32> to vector<2x1xf32>
    %269 = vector.broadcast %268 : vector<2x1xf32> to vector<2x8xf32>
    %270 = vector.broadcast %cst_51 : f32 to vector<2x8xf32>
    %271 = arith.select %267, %269, %270 : vector<2x8xi1>, vector<2x8xf32>
    %272 = arith.addf %193, %271 : vector<2x8xf32>
    %c5_i32_52 = arith.constant 5 : i32
    %273 = vector.broadcast %c5_i32_52 : i32 to vector<2x8xi32>
    %274 = arith.cmpi eq, %3, %273 : vector<2x8xi32>
    %cst_53 = arith.constant 0.000000e+00 : f32
    %275 = vector.shape_cast %265 : vector<2x1xf32> to vector<2x1xf32>
    %276 = vector.broadcast %275 : vector<2x1xf32> to vector<2x8xf32>
    %277 = vector.broadcast %cst_53 : f32 to vector<2x8xf32>
    %278 = arith.select %274, %276, %277 : vector<2x8xi1>, vector<2x8xf32>
    %279 = arith.addf %272, %278 : vector<2x8xf32>
    %280 = vector.shape_cast %251 : vector<2x1xi1> to vector<2x1xi1>
    %281 = vector.broadcast %280 : vector<2x1xi1> to vector<2x16xi1>
    %282 = arith.select %281, %229, %208 : vector<2x16xi1>, vector<2x16xf32>
    %283 = vector.shape_cast %253 : vector<2x1xi1> to vector<2x1xi1>
    %284 = vector.broadcast %283 : vector<2x1xi1> to vector<2x16xi1>
    %285 = arith.select %284, %249, %209 : vector<2x16xi1>, vector<2x16xf32>
    %286 = tpu.concatenate %282, %285 in 1 : vector<2x16xf32>, vector<2x16xf32> -> vector<2x32xf32>
    %cst_54 = arith.constant dense<0.000000e+00> : vector<2x96xf32>
    %287 = tpu.matmul %286, %15, %cst_54 {dimension_numbers = #tpu.dot_dimension_numbers<[1], [0], [0], [1], [0, 0, 1, 1], [], []>} : vector<2x32xf32>, vector<32x96xf32>, vector<2x96xf32> -> vector<2x96xf32>
    %288 = vector.broadcast %16 : vector<1x96xf32> to vector<2x96xf32>
    %289 = arith.addf %287, %288 : vector<2x96xf32>
    %290 = vector.extract_strided_slice %289 {offsets = [0, 0], sizes = [2, 48], strides = [1, 1]} : vector<2x96xf32> to vector<2x48xf32>
    %291 = vector.extract_strided_slice %289 {offsets = [0, 48], sizes = [2, 48], strides = [1, 1]} : vector<2x96xf32> to vector<2x48xf32>
    %292 = vector.extract_strided_slice %26 {offsets = [6, 0], sizes = [2, 48], strides = [1, 1]} : vector<16x96xf32> to vector<2x48xf32>
    %293 = vector.extract_strided_slice %26 {offsets = [8, 48], sizes = [2, 48], strides = [1, 1]} : vector<16x96xf32> to vector<2x48xf32>
    %294 = vector.extract_strided_slice %286 {offsets = [0, 0], sizes = [2, 16], strides = [1, 1]} : vector<2x32xf32> to vector<2x16xf32>
    %295 = vector.extract_strided_slice %286 {offsets = [0, 16], sizes = [2, 16], strides = [1, 1]} : vector<2x32xf32> to vector<2x16xf32>
    %296 = vector.extract_strided_slice %292 {offsets = [0, 0], sizes = [2, 32], strides = [1, 1]} : vector<2x48xf32> to vector<2x32xf32>
    %297 = vector.extract_strided_slice %290 {offsets = [0, 0], sizes = [2, 32], strides = [1, 1]} : vector<2x48xf32> to vector<2x32xf32>
    %298 = arith.addf %296, %297 : vector<2x32xf32>
    %299 = arith.negf %298 : vector<2x32xf32>
    %300 = math.exp %299 : vector<2x32xf32>
    %cst_55 = arith.constant 1.000000e+00 : f32
    %301 = vector.broadcast %cst_55 : f32 to vector<2x32xf32>
    %302 = arith.addf %301, %300 : vector<2x32xf32>
    %303 = arith.divf %301, %302 : vector<2x32xf32>
    %304 = vector.extract_strided_slice %303 {offsets = [0, 0], sizes = [2, 16], strides = [1, 1]} : vector<2x32xf32> to vector<2x16xf32>
    %305 = vector.extract_strided_slice %303 {offsets = [0, 16], sizes = [2, 16], strides = [1, 1]} : vector<2x32xf32> to vector<2x16xf32>
    %306 = vector.extract_strided_slice %292 {offsets = [0, 32], sizes = [2, 16], strides = [1, 1]} : vector<2x48xf32> to vector<2x16xf32>
    %307 = vector.extract_strided_slice %290 {offsets = [0, 32], sizes = [2, 16], strides = [1, 1]} : vector<2x48xf32> to vector<2x16xf32>
    %308 = arith.mulf %304, %307 : vector<2x16xf32>
    %309 = arith.addf %306, %308 : vector<2x16xf32>
    %310 = math.tanh %309 : vector<2x16xf32>
    %cst_56 = arith.constant 1.000000e+00 : f32
    %311 = vector.broadcast %cst_56 : f32 to vector<2x16xf32>
    %312 = arith.subf %311, %305 : vector<2x16xf32>
    %313 = arith.mulf %312, %310 : vector<2x16xf32>
    %314 = arith.mulf %305, %294 : vector<2x16xf32>
    %315 = arith.addf %313, %314 : vector<2x16xf32>
    %316 = vector.extract_strided_slice %293 {offsets = [0, 0], sizes = [2, 32], strides = [1, 1]} : vector<2x48xf32> to vector<2x32xf32>
    %317 = vector.extract_strided_slice %291 {offsets = [0, 0], sizes = [2, 32], strides = [1, 1]} : vector<2x48xf32> to vector<2x32xf32>
    %318 = arith.addf %316, %317 : vector<2x32xf32>
    %319 = arith.negf %318 : vector<2x32xf32>
    %320 = math.exp %319 : vector<2x32xf32>
    %cst_57 = arith.constant 1.000000e+00 : f32
    %321 = vector.broadcast %cst_57 : f32 to vector<2x32xf32>
    %322 = arith.addf %321, %320 : vector<2x32xf32>
    %323 = arith.divf %321, %322 : vector<2x32xf32>
    %324 = vector.extract_strided_slice %323 {offsets = [0, 0], sizes = [2, 16], strides = [1, 1]} : vector<2x32xf32> to vector<2x16xf32>
    %325 = vector.extract_strided_slice %323 {offsets = [0, 16], sizes = [2, 16], strides = [1, 1]} : vector<2x32xf32> to vector<2x16xf32>
    %326 = vector.extract_strided_slice %293 {offsets = [0, 32], sizes = [2, 16], strides = [1, 1]} : vector<2x48xf32> to vector<2x16xf32>
    %327 = vector.extract_strided_slice %291 {offsets = [0, 32], sizes = [2, 16], strides = [1, 1]} : vector<2x48xf32> to vector<2x16xf32>
    %328 = arith.mulf %324, %327 : vector<2x16xf32>
    %329 = arith.addf %326, %328 : vector<2x16xf32>
    %330 = math.tanh %329 : vector<2x16xf32>
    %cst_58 = arith.constant 1.000000e+00 : f32
    %331 = vector.broadcast %cst_58 : f32 to vector<2x16xf32>
    %332 = arith.subf %331, %325 : vector<2x16xf32>
    %333 = arith.mulf %332, %330 : vector<2x16xf32>
    %334 = arith.mulf %325, %295 : vector<2x16xf32>
    %335 = arith.addf %333, %334 : vector<2x16xf32>
    %c3_i32 = arith.constant 3 : i32
    %336 = vector.broadcast %c3_i32 : i32 to vector<2x1xi32>
    %337 = arith.cmpi sgt, %2, %336 : vector<2x1xi32>
    %c4_i32 = arith.constant 4 : i32
    %338 = vector.broadcast %c4_i32 : i32 to vector<2x1xi32>
    %339 = arith.cmpi sgt, %2, %338 : vector<2x1xi32>
    %340 = vector.broadcast %18 : vector<1x16xf32> to vector<2x16xf32>
    %341 = arith.mulf %315, %340 : vector<2x16xf32>
    %cst_59 = arith.constant dense<0.000000e+00> : vector<2xf32>
    %342 = vector.multi_reduction <add>, %341, %cst_59 [1] : vector<2x16xf32> to vector<2xf32>
    %343 = vector.shape_cast %342 : vector<2xf32> to vector<2x1xf32>
    %cst_60 = arith.constant 0.000000e+00 : f32
    %344 = vector.broadcast %cst_60 : f32 to vector<2x1xf32>
    %345 = arith.select %337, %343, %344 : vector<2x1xi1>, vector<2x1xf32>
    %346 = vector.broadcast %19 : vector<1x16xf32> to vector<2x16xf32>
    %347 = arith.mulf %335, %346 : vector<2x16xf32>
    %cst_61 = arith.constant dense<0.000000e+00> : vector<2xf32>
    %348 = vector.multi_reduction <add>, %347, %cst_61 [1] : vector<2x16xf32> to vector<2xf32>
    %349 = vector.shape_cast %348 : vector<2xf32> to vector<2x1xf32>
    %cst_62 = arith.constant 0.000000e+00 : f32
    %350 = vector.broadcast %cst_62 : f32 to vector<2x1xf32>
    %351 = arith.select %339, %349, %350 : vector<2x1xi1>, vector<2x1xf32>
    %c3_i32_63 = arith.constant 3 : i32
    %352 = vector.broadcast %c3_i32_63 : i32 to vector<2x8xi32>
    %353 = arith.cmpi eq, %3, %352 : vector<2x8xi32>
    %cst_64 = arith.constant 0.000000e+00 : f32
    %354 = vector.shape_cast %345 : vector<2x1xf32> to vector<2x1xf32>
    %355 = vector.broadcast %354 : vector<2x1xf32> to vector<2x8xf32>
    %356 = vector.broadcast %cst_64 : f32 to vector<2x8xf32>
    %357 = arith.select %353, %355, %356 : vector<2x8xi1>, vector<2x8xf32>
    %358 = arith.addf %279, %357 : vector<2x8xf32>
    %c4_i32_65 = arith.constant 4 : i32
    %359 = vector.broadcast %c4_i32_65 : i32 to vector<2x8xi32>
    %360 = arith.cmpi eq, %3, %359 : vector<2x8xi32>
    %cst_66 = arith.constant 0.000000e+00 : f32
    %361 = vector.shape_cast %351 : vector<2x1xf32> to vector<2x1xf32>
    %362 = vector.broadcast %361 : vector<2x1xf32> to vector<2x8xf32>
    %363 = vector.broadcast %cst_66 : f32 to vector<2x8xf32>
    %364 = arith.select %360, %362, %363 : vector<2x8xi1>, vector<2x8xf32>
    %365 = arith.addf %358, %364 : vector<2x8xf32>
    %366 = vector.shape_cast %337 : vector<2x1xi1> to vector<2x1xi1>
    %367 = vector.broadcast %366 : vector<2x1xi1> to vector<2x16xi1>
    %368 = arith.select %367, %315, %294 : vector<2x16xi1>, vector<2x16xf32>
    %369 = vector.shape_cast %339 : vector<2x1xi1> to vector<2x1xi1>
    %370 = vector.broadcast %369 : vector<2x1xi1> to vector<2x16xi1>
    %371 = arith.select %370, %335, %295 : vector<2x16xi1>, vector<2x16xf32>
    %372 = tpu.concatenate %368, %371 in 1 : vector<2x16xf32>, vector<2x16xf32> -> vector<2x32xf32>
    %cst_67 = arith.constant dense<0.000000e+00> : vector<2x96xf32>
    %373 = tpu.matmul %372, %15, %cst_67 {dimension_numbers = #tpu.dot_dimension_numbers<[1], [0], [0], [1], [0, 0, 1, 1], [], []>} : vector<2x32xf32>, vector<32x96xf32>, vector<2x96xf32> -> vector<2x96xf32>
    %374 = vector.broadcast %16 : vector<1x96xf32> to vector<2x96xf32>
    %375 = arith.addf %373, %374 : vector<2x96xf32>
    %376 = vector.extract_strided_slice %375 {offsets = [0, 0], sizes = [2, 48], strides = [1, 1]} : vector<2x96xf32> to vector<2x48xf32>
    %377 = vector.extract_strided_slice %375 {offsets = [0, 48], sizes = [2, 48], strides = [1, 1]} : vector<2x96xf32> to vector<2x48xf32>
    %378 = vector.extract_strided_slice %26 {offsets = [8, 0], sizes = [2, 48], strides = [1, 1]} : vector<16x96xf32> to vector<2x48xf32>
    %379 = vector.extract_strided_slice %26 {offsets = [6, 48], sizes = [2, 48], strides = [1, 1]} : vector<16x96xf32> to vector<2x48xf32>
    %380 = vector.extract_strided_slice %372 {offsets = [0, 0], sizes = [2, 16], strides = [1, 1]} : vector<2x32xf32> to vector<2x16xf32>
    %381 = vector.extract_strided_slice %372 {offsets = [0, 16], sizes = [2, 16], strides = [1, 1]} : vector<2x32xf32> to vector<2x16xf32>
    %382 = vector.extract_strided_slice %378 {offsets = [0, 0], sizes = [2, 32], strides = [1, 1]} : vector<2x48xf32> to vector<2x32xf32>
    %383 = vector.extract_strided_slice %376 {offsets = [0, 0], sizes = [2, 32], strides = [1, 1]} : vector<2x48xf32> to vector<2x32xf32>
    %384 = arith.addf %382, %383 : vector<2x32xf32>
    %385 = arith.negf %384 : vector<2x32xf32>
    %386 = math.exp %385 : vector<2x32xf32>
    %cst_68 = arith.constant 1.000000e+00 : f32
    %387 = vector.broadcast %cst_68 : f32 to vector<2x32xf32>
    %388 = arith.addf %387, %386 : vector<2x32xf32>
    %389 = arith.divf %387, %388 : vector<2x32xf32>
    %390 = vector.extract_strided_slice %389 {offsets = [0, 0], sizes = [2, 16], strides = [1, 1]} : vector<2x32xf32> to vector<2x16xf32>
    %391 = vector.extract_strided_slice %389 {offsets = [0, 16], sizes = [2, 16], strides = [1, 1]} : vector<2x32xf32> to vector<2x16xf32>
    %392 = vector.extract_strided_slice %378 {offsets = [0, 32], sizes = [2, 16], strides = [1, 1]} : vector<2x48xf32> to vector<2x16xf32>
    %393 = vector.extract_strided_slice %376 {offsets = [0, 32], sizes = [2, 16], strides = [1, 1]} : vector<2x48xf32> to vector<2x16xf32>
    %394 = arith.mulf %390, %393 : vector<2x16xf32>
    %395 = arith.addf %392, %394 : vector<2x16xf32>
    %396 = math.tanh %395 : vector<2x16xf32>
    %cst_69 = arith.constant 1.000000e+00 : f32
    %397 = vector.broadcast %cst_69 : f32 to vector<2x16xf32>
    %398 = arith.subf %397, %391 : vector<2x16xf32>
    %399 = arith.mulf %398, %396 : vector<2x16xf32>
    %400 = arith.mulf %391, %380 : vector<2x16xf32>
    %401 = arith.addf %399, %400 : vector<2x16xf32>
    %402 = vector.extract_strided_slice %379 {offsets = [0, 0], sizes = [2, 32], strides = [1, 1]} : vector<2x48xf32> to vector<2x32xf32>
    %403 = vector.extract_strided_slice %377 {offsets = [0, 0], sizes = [2, 32], strides = [1, 1]} : vector<2x48xf32> to vector<2x32xf32>
    %404 = arith.addf %402, %403 : vector<2x32xf32>
    %405 = arith.negf %404 : vector<2x32xf32>
    %406 = math.exp %405 : vector<2x32xf32>
    %cst_70 = arith.constant 1.000000e+00 : f32
    %407 = vector.broadcast %cst_70 : f32 to vector<2x32xf32>
    %408 = arith.addf %407, %406 : vector<2x32xf32>
    %409 = arith.divf %407, %408 : vector<2x32xf32>
    %410 = vector.extract_strided_slice %409 {offsets = [0, 0], sizes = [2, 16], strides = [1, 1]} : vector<2x32xf32> to vector<2x16xf32>
    %411 = vector.extract_strided_slice %409 {offsets = [0, 16], sizes = [2, 16], strides = [1, 1]} : vector<2x32xf32> to vector<2x16xf32>
    %412 = vector.extract_strided_slice %379 {offsets = [0, 32], sizes = [2, 16], strides = [1, 1]} : vector<2x48xf32> to vector<2x16xf32>
    %413 = vector.extract_strided_slice %377 {offsets = [0, 32], sizes = [2, 16], strides = [1, 1]} : vector<2x48xf32> to vector<2x16xf32>
    %414 = arith.mulf %410, %413 : vector<2x16xf32>
    %415 = arith.addf %412, %414 : vector<2x16xf32>
    %416 = math.tanh %415 : vector<2x16xf32>
    %cst_71 = arith.constant 1.000000e+00 : f32
    %417 = vector.broadcast %cst_71 : f32 to vector<2x16xf32>
    %418 = arith.subf %417, %411 : vector<2x16xf32>
    %419 = arith.mulf %418, %416 : vector<2x16xf32>
    %420 = arith.mulf %411, %381 : vector<2x16xf32>
    %421 = arith.addf %419, %420 : vector<2x16xf32>
    %c4_i32_72 = arith.constant 4 : i32
    %422 = vector.broadcast %c4_i32_72 : i32 to vector<2x1xi32>
    %423 = arith.cmpi sgt, %2, %422 : vector<2x1xi32>
    %c3_i32_73 = arith.constant 3 : i32
    %424 = vector.broadcast %c3_i32_73 : i32 to vector<2x1xi32>
    %425 = arith.cmpi sgt, %2, %424 : vector<2x1xi32>
    %426 = vector.broadcast %18 : vector<1x16xf32> to vector<2x16xf32>
    %427 = arith.mulf %401, %426 : vector<2x16xf32>
    %cst_74 = arith.constant dense<0.000000e+00> : vector<2xf32>
    %428 = vector.multi_reduction <add>, %427, %cst_74 [1] : vector<2x16xf32> to vector<2xf32>
    %429 = vector.shape_cast %428 : vector<2xf32> to vector<2x1xf32>
    %cst_75 = arith.constant 0.000000e+00 : f32
    %430 = vector.broadcast %cst_75 : f32 to vector<2x1xf32>
    %431 = arith.select %423, %429, %430 : vector<2x1xi1>, vector<2x1xf32>
    %432 = vector.broadcast %19 : vector<1x16xf32> to vector<2x16xf32>
    %433 = arith.mulf %421, %432 : vector<2x16xf32>
    %cst_76 = arith.constant dense<0.000000e+00> : vector<2xf32>
    %434 = vector.multi_reduction <add>, %433, %cst_76 [1] : vector<2x16xf32> to vector<2xf32>
    %435 = vector.shape_cast %434 : vector<2xf32> to vector<2x1xf32>
    %cst_77 = arith.constant 0.000000e+00 : f32
    %436 = vector.broadcast %cst_77 : f32 to vector<2x1xf32>
    %437 = arith.select %425, %435, %436 : vector<2x1xi1>, vector<2x1xf32>
    %c4_i32_78 = arith.constant 4 : i32
    %438 = vector.broadcast %c4_i32_78 : i32 to vector<2x8xi32>
    %439 = arith.cmpi eq, %3, %438 : vector<2x8xi32>
    %cst_79 = arith.constant 0.000000e+00 : f32
    %440 = vector.shape_cast %431 : vector<2x1xf32> to vector<2x1xf32>
    %441 = vector.broadcast %440 : vector<2x1xf32> to vector<2x8xf32>
    %442 = vector.broadcast %cst_79 : f32 to vector<2x8xf32>
    %443 = arith.select %439, %441, %442 : vector<2x8xi1>, vector<2x8xf32>
    %444 = arith.addf %365, %443 : vector<2x8xf32>
    %c3_i32_80 = arith.constant 3 : i32
    %445 = vector.broadcast %c3_i32_80 : i32 to vector<2x8xi32>
    %446 = arith.cmpi eq, %3, %445 : vector<2x8xi32>
    %cst_81 = arith.constant 0.000000e+00 : f32
    %447 = vector.shape_cast %437 : vector<2x1xf32> to vector<2x1xf32>
    %448 = vector.broadcast %447 : vector<2x1xf32> to vector<2x8xf32>
    %449 = vector.broadcast %cst_81 : f32 to vector<2x8xf32>
    %450 = arith.select %446, %448, %449 : vector<2x8xi1>, vector<2x8xf32>
    %451 = arith.addf %444, %450 : vector<2x8xf32>
    %452 = vector.shape_cast %423 : vector<2x1xi1> to vector<2x1xi1>
    %453 = vector.broadcast %452 : vector<2x1xi1> to vector<2x16xi1>
    %454 = arith.select %453, %401, %380 : vector<2x16xi1>, vector<2x16xf32>
    %455 = vector.shape_cast %425 : vector<2x1xi1> to vector<2x1xi1>
    %456 = vector.broadcast %455 : vector<2x1xi1> to vector<2x16xi1>
    %457 = arith.select %456, %421, %381 : vector<2x16xi1>, vector<2x16xf32>
    %458 = tpu.concatenate %454, %457 in 1 : vector<2x16xf32>, vector<2x16xf32> -> vector<2x32xf32>
    %cst_82 = arith.constant dense<0.000000e+00> : vector<2x96xf32>
    %459 = tpu.matmul %458, %15, %cst_82 {dimension_numbers = #tpu.dot_dimension_numbers<[1], [0], [0], [1], [0, 0, 1, 1], [], []>} : vector<2x32xf32>, vector<32x96xf32>, vector<2x96xf32> -> vector<2x96xf32>
    %460 = vector.broadcast %16 : vector<1x96xf32> to vector<2x96xf32>
    %461 = arith.addf %459, %460 : vector<2x96xf32>
    %462 = vector.extract_strided_slice %461 {offsets = [0, 0], sizes = [2, 48], strides = [1, 1]} : vector<2x96xf32> to vector<2x48xf32>
    %463 = vector.extract_strided_slice %461 {offsets = [0, 48], sizes = [2, 48], strides = [1, 1]} : vector<2x96xf32> to vector<2x48xf32>
    %464 = vector.extract_strided_slice %26 {offsets = [10, 0], sizes = [2, 48], strides = [1, 1]} : vector<16x96xf32> to vector<2x48xf32>
    %465 = vector.extract_strided_slice %26 {offsets = [4, 48], sizes = [2, 48], strides = [1, 1]} : vector<16x96xf32> to vector<2x48xf32>
    %466 = vector.extract_strided_slice %458 {offsets = [0, 0], sizes = [2, 16], strides = [1, 1]} : vector<2x32xf32> to vector<2x16xf32>
    %467 = vector.extract_strided_slice %458 {offsets = [0, 16], sizes = [2, 16], strides = [1, 1]} : vector<2x32xf32> to vector<2x16xf32>
    %468 = vector.extract_strided_slice %464 {offsets = [0, 0], sizes = [2, 32], strides = [1, 1]} : vector<2x48xf32> to vector<2x32xf32>
    %469 = vector.extract_strided_slice %462 {offsets = [0, 0], sizes = [2, 32], strides = [1, 1]} : vector<2x48xf32> to vector<2x32xf32>
    %470 = arith.addf %468, %469 : vector<2x32xf32>
    %471 = arith.negf %470 : vector<2x32xf32>
    %472 = math.exp %471 : vector<2x32xf32>
    %cst_83 = arith.constant 1.000000e+00 : f32
    %473 = vector.broadcast %cst_83 : f32 to vector<2x32xf32>
    %474 = arith.addf %473, %472 : vector<2x32xf32>
    %475 = arith.divf %473, %474 : vector<2x32xf32>
    %476 = vector.extract_strided_slice %475 {offsets = [0, 0], sizes = [2, 16], strides = [1, 1]} : vector<2x32xf32> to vector<2x16xf32>
    %477 = vector.extract_strided_slice %475 {offsets = [0, 16], sizes = [2, 16], strides = [1, 1]} : vector<2x32xf32> to vector<2x16xf32>
    %478 = vector.extract_strided_slice %464 {offsets = [0, 32], sizes = [2, 16], strides = [1, 1]} : vector<2x48xf32> to vector<2x16xf32>
    %479 = vector.extract_strided_slice %462 {offsets = [0, 32], sizes = [2, 16], strides = [1, 1]} : vector<2x48xf32> to vector<2x16xf32>
    %480 = arith.mulf %476, %479 : vector<2x16xf32>
    %481 = arith.addf %478, %480 : vector<2x16xf32>
    %482 = math.tanh %481 : vector<2x16xf32>
    %cst_84 = arith.constant 1.000000e+00 : f32
    %483 = vector.broadcast %cst_84 : f32 to vector<2x16xf32>
    %484 = arith.subf %483, %477 : vector<2x16xf32>
    %485 = arith.mulf %484, %482 : vector<2x16xf32>
    %486 = arith.mulf %477, %466 : vector<2x16xf32>
    %487 = arith.addf %485, %486 : vector<2x16xf32>
    %488 = vector.extract_strided_slice %465 {offsets = [0, 0], sizes = [2, 32], strides = [1, 1]} : vector<2x48xf32> to vector<2x32xf32>
    %489 = vector.extract_strided_slice %463 {offsets = [0, 0], sizes = [2, 32], strides = [1, 1]} : vector<2x48xf32> to vector<2x32xf32>
    %490 = arith.addf %488, %489 : vector<2x32xf32>
    %491 = arith.negf %490 : vector<2x32xf32>
    %492 = math.exp %491 : vector<2x32xf32>
    %cst_85 = arith.constant 1.000000e+00 : f32
    %493 = vector.broadcast %cst_85 : f32 to vector<2x32xf32>
    %494 = arith.addf %493, %492 : vector<2x32xf32>
    %495 = arith.divf %493, %494 : vector<2x32xf32>
    %496 = vector.extract_strided_slice %495 {offsets = [0, 0], sizes = [2, 16], strides = [1, 1]} : vector<2x32xf32> to vector<2x16xf32>
    %497 = vector.extract_strided_slice %495 {offsets = [0, 16], sizes = [2, 16], strides = [1, 1]} : vector<2x32xf32> to vector<2x16xf32>
    %498 = vector.extract_strided_slice %465 {offsets = [0, 32], sizes = [2, 16], strides = [1, 1]} : vector<2x48xf32> to vector<2x16xf32>
    %499 = vector.extract_strided_slice %463 {offsets = [0, 32], sizes = [2, 16], strides = [1, 1]} : vector<2x48xf32> to vector<2x16xf32>
    %500 = arith.mulf %496, %499 : vector<2x16xf32>
    %501 = arith.addf %498, %500 : vector<2x16xf32>
    %502 = math.tanh %501 : vector<2x16xf32>
    %cst_86 = arith.constant 1.000000e+00 : f32
    %503 = vector.broadcast %cst_86 : f32 to vector<2x16xf32>
    %504 = arith.subf %503, %497 : vector<2x16xf32>
    %505 = arith.mulf %504, %502 : vector<2x16xf32>
    %506 = arith.mulf %497, %467 : vector<2x16xf32>
    %507 = arith.addf %505, %506 : vector<2x16xf32>
    %c5_i32_87 = arith.constant 5 : i32
    %508 = vector.broadcast %c5_i32_87 : i32 to vector<2x1xi32>
    %509 = arith.cmpi sgt, %2, %508 : vector<2x1xi32>
    %c2_i32_88 = arith.constant 2 : i32
    %510 = vector.broadcast %c2_i32_88 : i32 to vector<2x1xi32>
    %511 = arith.cmpi sgt, %2, %510 : vector<2x1xi32>
    %512 = vector.broadcast %18 : vector<1x16xf32> to vector<2x16xf32>
    %513 = arith.mulf %487, %512 : vector<2x16xf32>
    %cst_89 = arith.constant dense<0.000000e+00> : vector<2xf32>
    %514 = vector.multi_reduction <add>, %513, %cst_89 [1] : vector<2x16xf32> to vector<2xf32>
    %515 = vector.shape_cast %514 : vector<2xf32> to vector<2x1xf32>
    %cst_90 = arith.constant 0.000000e+00 : f32
    %516 = vector.broadcast %cst_90 : f32 to vector<2x1xf32>
    %517 = arith.select %509, %515, %516 : vector<2x1xi1>, vector<2x1xf32>
    %518 = vector.broadcast %19 : vector<1x16xf32> to vector<2x16xf32>
    %519 = arith.mulf %507, %518 : vector<2x16xf32>
    %cst_91 = arith.constant dense<0.000000e+00> : vector<2xf32>
    %520 = vector.multi_reduction <add>, %519, %cst_91 [1] : vector<2x16xf32> to vector<2xf32>
    %521 = vector.shape_cast %520 : vector<2xf32> to vector<2x1xf32>
    %cst_92 = arith.constant 0.000000e+00 : f32
    %522 = vector.broadcast %cst_92 : f32 to vector<2x1xf32>
    %523 = arith.select %511, %521, %522 : vector<2x1xi1>, vector<2x1xf32>
    %c5_i32_93 = arith.constant 5 : i32
    %524 = vector.broadcast %c5_i32_93 : i32 to vector<2x8xi32>
    %525 = arith.cmpi eq, %3, %524 : vector<2x8xi32>
    %cst_94 = arith.constant 0.000000e+00 : f32
    %526 = vector.shape_cast %517 : vector<2x1xf32> to vector<2x1xf32>
    %527 = vector.broadcast %526 : vector<2x1xf32> to vector<2x8xf32>
    %528 = vector.broadcast %cst_94 : f32 to vector<2x8xf32>
    %529 = arith.select %525, %527, %528 : vector<2x8xi1>, vector<2x8xf32>
    %530 = arith.addf %451, %529 : vector<2x8xf32>
    %c2_i32_95 = arith.constant 2 : i32
    %531 = vector.broadcast %c2_i32_95 : i32 to vector<2x8xi32>
    %532 = arith.cmpi eq, %3, %531 : vector<2x8xi32>
    %cst_96 = arith.constant 0.000000e+00 : f32
    %533 = vector.shape_cast %523 : vector<2x1xf32> to vector<2x1xf32>
    %534 = vector.broadcast %533 : vector<2x1xf32> to vector<2x8xf32>
    %535 = vector.broadcast %cst_96 : f32 to vector<2x8xf32>
    %536 = arith.select %532, %534, %535 : vector<2x8xi1>, vector<2x8xf32>
    %537 = arith.addf %530, %536 : vector<2x8xf32>
    %538 = vector.shape_cast %509 : vector<2x1xi1> to vector<2x1xi1>
    %539 = vector.broadcast %538 : vector<2x1xi1> to vector<2x16xi1>
    %540 = arith.select %539, %487, %466 : vector<2x16xi1>, vector<2x16xf32>
    %541 = vector.shape_cast %511 : vector<2x1xi1> to vector<2x1xi1>
    %542 = vector.broadcast %541 : vector<2x1xi1> to vector<2x16xi1>
    %543 = arith.select %542, %507, %467 : vector<2x16xi1>, vector<2x16xf32>
    %544 = tpu.concatenate %540, %543 in 1 : vector<2x16xf32>, vector<2x16xf32> -> vector<2x32xf32>
    %cst_97 = arith.constant dense<0.000000e+00> : vector<2x96xf32>
    %545 = tpu.matmul %544, %15, %cst_97 {dimension_numbers = #tpu.dot_dimension_numbers<[1], [0], [0], [1], [0, 0, 1, 1], [], []>} : vector<2x32xf32>, vector<32x96xf32>, vector<2x96xf32> -> vector<2x96xf32>
    %546 = vector.broadcast %16 : vector<1x96xf32> to vector<2x96xf32>
    %547 = arith.addf %545, %546 : vector<2x96xf32>
    %548 = vector.extract_strided_slice %547 {offsets = [0, 0], sizes = [2, 48], strides = [1, 1]} : vector<2x96xf32> to vector<2x48xf32>
    %549 = vector.extract_strided_slice %547 {offsets = [0, 48], sizes = [2, 48], strides = [1, 1]} : vector<2x96xf32> to vector<2x48xf32>
    %550 = vector.extract_strided_slice %26 {offsets = [12, 0], sizes = [2, 48], strides = [1, 1]} : vector<16x96xf32> to vector<2x48xf32>
    %551 = vector.extract_strided_slice %26 {offsets = [2, 48], sizes = [2, 48], strides = [1, 1]} : vector<16x96xf32> to vector<2x48xf32>
    %552 = vector.extract_strided_slice %544 {offsets = [0, 0], sizes = [2, 16], strides = [1, 1]} : vector<2x32xf32> to vector<2x16xf32>
    %553 = vector.extract_strided_slice %544 {offsets = [0, 16], sizes = [2, 16], strides = [1, 1]} : vector<2x32xf32> to vector<2x16xf32>
    %554 = vector.extract_strided_slice %550 {offsets = [0, 0], sizes = [2, 32], strides = [1, 1]} : vector<2x48xf32> to vector<2x32xf32>
    %555 = vector.extract_strided_slice %548 {offsets = [0, 0], sizes = [2, 32], strides = [1, 1]} : vector<2x48xf32> to vector<2x32xf32>
    %556 = arith.addf %554, %555 : vector<2x32xf32>
    %557 = arith.negf %556 : vector<2x32xf32>
    %558 = math.exp %557 : vector<2x32xf32>
    %cst_98 = arith.constant 1.000000e+00 : f32
    %559 = vector.broadcast %cst_98 : f32 to vector<2x32xf32>
    %560 = arith.addf %559, %558 : vector<2x32xf32>
    %561 = arith.divf %559, %560 : vector<2x32xf32>
    %562 = vector.extract_strided_slice %561 {offsets = [0, 0], sizes = [2, 16], strides = [1, 1]} : vector<2x32xf32> to vector<2x16xf32>
    %563 = vector.extract_strided_slice %561 {offsets = [0, 16], sizes = [2, 16], strides = [1, 1]} : vector<2x32xf32> to vector<2x16xf32>
    %564 = vector.extract_strided_slice %550 {offsets = [0, 32], sizes = [2, 16], strides = [1, 1]} : vector<2x48xf32> to vector<2x16xf32>
    %565 = vector.extract_strided_slice %548 {offsets = [0, 32], sizes = [2, 16], strides = [1, 1]} : vector<2x48xf32> to vector<2x16xf32>
    %566 = arith.mulf %562, %565 : vector<2x16xf32>
    %567 = arith.addf %564, %566 : vector<2x16xf32>
    %568 = math.tanh %567 : vector<2x16xf32>
    %cst_99 = arith.constant 1.000000e+00 : f32
    %569 = vector.broadcast %cst_99 : f32 to vector<2x16xf32>
    %570 = arith.subf %569, %563 : vector<2x16xf32>
    %571 = arith.mulf %570, %568 : vector<2x16xf32>
    %572 = arith.mulf %563, %552 : vector<2x16xf32>
    %573 = arith.addf %571, %572 : vector<2x16xf32>
    %574 = vector.extract_strided_slice %551 {offsets = [0, 0], sizes = [2, 32], strides = [1, 1]} : vector<2x48xf32> to vector<2x32xf32>
    %575 = vector.extract_strided_slice %549 {offsets = [0, 0], sizes = [2, 32], strides = [1, 1]} : vector<2x48xf32> to vector<2x32xf32>
    %576 = arith.addf %574, %575 : vector<2x32xf32>
    %577 = arith.negf %576 : vector<2x32xf32>
    %578 = math.exp %577 : vector<2x32xf32>
    %cst_100 = arith.constant 1.000000e+00 : f32
    %579 = vector.broadcast %cst_100 : f32 to vector<2x32xf32>
    %580 = arith.addf %579, %578 : vector<2x32xf32>
    %581 = arith.divf %579, %580 : vector<2x32xf32>
    %582 = vector.extract_strided_slice %581 {offsets = [0, 0], sizes = [2, 16], strides = [1, 1]} : vector<2x32xf32> to vector<2x16xf32>
    %583 = vector.extract_strided_slice %581 {offsets = [0, 16], sizes = [2, 16], strides = [1, 1]} : vector<2x32xf32> to vector<2x16xf32>
    %584 = vector.extract_strided_slice %551 {offsets = [0, 32], sizes = [2, 16], strides = [1, 1]} : vector<2x48xf32> to vector<2x16xf32>
    %585 = vector.extract_strided_slice %549 {offsets = [0, 32], sizes = [2, 16], strides = [1, 1]} : vector<2x48xf32> to vector<2x16xf32>
    %586 = arith.mulf %582, %585 : vector<2x16xf32>
    %587 = arith.addf %584, %586 : vector<2x16xf32>
    %588 = math.tanh %587 : vector<2x16xf32>
    %cst_101 = arith.constant 1.000000e+00 : f32
    %589 = vector.broadcast %cst_101 : f32 to vector<2x16xf32>
    %590 = arith.subf %589, %583 : vector<2x16xf32>
    %591 = arith.mulf %590, %588 : vector<2x16xf32>
    %592 = arith.mulf %583, %553 : vector<2x16xf32>
    %593 = arith.addf %591, %592 : vector<2x16xf32>
    %c6_i32_102 = arith.constant 6 : i32
    %594 = vector.broadcast %c6_i32_102 : i32 to vector<2x1xi32>
    %595 = arith.cmpi sgt, %2, %594 : vector<2x1xi32>
    %c1_i32_103 = arith.constant 1 : i32
    %596 = vector.broadcast %c1_i32_103 : i32 to vector<2x1xi32>
    %597 = arith.cmpi sgt, %2, %596 : vector<2x1xi32>
    %598 = vector.broadcast %18 : vector<1x16xf32> to vector<2x16xf32>
    %599 = arith.mulf %573, %598 : vector<2x16xf32>
    %cst_104 = arith.constant dense<0.000000e+00> : vector<2xf32>
    %600 = vector.multi_reduction <add>, %599, %cst_104 [1] : vector<2x16xf32> to vector<2xf32>
    %601 = vector.shape_cast %600 : vector<2xf32> to vector<2x1xf32>
    %cst_105 = arith.constant 0.000000e+00 : f32
    %602 = vector.broadcast %cst_105 : f32 to vector<2x1xf32>
    %603 = arith.select %595, %601, %602 : vector<2x1xi1>, vector<2x1xf32>
    %604 = vector.broadcast %19 : vector<1x16xf32> to vector<2x16xf32>
    %605 = arith.mulf %593, %604 : vector<2x16xf32>
    %cst_106 = arith.constant dense<0.000000e+00> : vector<2xf32>
    %606 = vector.multi_reduction <add>, %605, %cst_106 [1] : vector<2x16xf32> to vector<2xf32>
    %607 = vector.shape_cast %606 : vector<2xf32> to vector<2x1xf32>
    %cst_107 = arith.constant 0.000000e+00 : f32
    %608 = vector.broadcast %cst_107 : f32 to vector<2x1xf32>
    %609 = arith.select %597, %607, %608 : vector<2x1xi1>, vector<2x1xf32>
    %c6_i32_108 = arith.constant 6 : i32
    %610 = vector.broadcast %c6_i32_108 : i32 to vector<2x8xi32>
    %611 = arith.cmpi eq, %3, %610 : vector<2x8xi32>
    %cst_109 = arith.constant 0.000000e+00 : f32
    %612 = vector.shape_cast %603 : vector<2x1xf32> to vector<2x1xf32>
    %613 = vector.broadcast %612 : vector<2x1xf32> to vector<2x8xf32>
    %614 = vector.broadcast %cst_109 : f32 to vector<2x8xf32>
    %615 = arith.select %611, %613, %614 : vector<2x8xi1>, vector<2x8xf32>
    %616 = arith.addf %537, %615 : vector<2x8xf32>
    %c1_i32_110 = arith.constant 1 : i32
    %617 = vector.broadcast %c1_i32_110 : i32 to vector<2x8xi32>
    %618 = arith.cmpi eq, %3, %617 : vector<2x8xi32>
    %cst_111 = arith.constant 0.000000e+00 : f32
    %619 = vector.shape_cast %609 : vector<2x1xf32> to vector<2x1xf32>
    %620 = vector.broadcast %619 : vector<2x1xf32> to vector<2x8xf32>
    %621 = vector.broadcast %cst_111 : f32 to vector<2x8xf32>
    %622 = arith.select %618, %620, %621 : vector<2x8xi1>, vector<2x8xf32>
    %623 = arith.addf %616, %622 : vector<2x8xf32>
    %624 = vector.shape_cast %595 : vector<2x1xi1> to vector<2x1xi1>
    %625 = vector.broadcast %624 : vector<2x1xi1> to vector<2x16xi1>
    %626 = arith.select %625, %573, %552 : vector<2x16xi1>, vector<2x16xf32>
    %627 = vector.shape_cast %597 : vector<2x1xi1> to vector<2x1xi1>
    %628 = vector.broadcast %627 : vector<2x1xi1> to vector<2x16xi1>
    %629 = arith.select %628, %593, %553 : vector<2x16xi1>, vector<2x16xf32>
    %630 = tpu.concatenate %626, %629 in 1 : vector<2x16xf32>, vector<2x16xf32> -> vector<2x32xf32>
    %cst_112 = arith.constant dense<0.000000e+00> : vector<2x96xf32>
    %631 = tpu.matmul %630, %15, %cst_112 {dimension_numbers = #tpu.dot_dimension_numbers<[1], [0], [0], [1], [0, 0, 1, 1], [], []>} : vector<2x32xf32>, vector<32x96xf32>, vector<2x96xf32> -> vector<2x96xf32>
    %632 = vector.broadcast %16 : vector<1x96xf32> to vector<2x96xf32>
    %633 = arith.addf %631, %632 : vector<2x96xf32>
    %634 = vector.extract_strided_slice %633 {offsets = [0, 0], sizes = [2, 48], strides = [1, 1]} : vector<2x96xf32> to vector<2x48xf32>
    %635 = vector.extract_strided_slice %633 {offsets = [0, 48], sizes = [2, 48], strides = [1, 1]} : vector<2x96xf32> to vector<2x48xf32>
    %636 = vector.extract_strided_slice %26 {offsets = [14, 0], sizes = [2, 48], strides = [1, 1]} : vector<16x96xf32> to vector<2x48xf32>
    %637 = vector.extract_strided_slice %26 {offsets = [0, 48], sizes = [2, 48], strides = [1, 1]} : vector<16x96xf32> to vector<2x48xf32>
    %638 = vector.extract_strided_slice %630 {offsets = [0, 0], sizes = [2, 16], strides = [1, 1]} : vector<2x32xf32> to vector<2x16xf32>
    %639 = vector.extract_strided_slice %630 {offsets = [0, 16], sizes = [2, 16], strides = [1, 1]} : vector<2x32xf32> to vector<2x16xf32>
    %640 = vector.extract_strided_slice %636 {offsets = [0, 0], sizes = [2, 32], strides = [1, 1]} : vector<2x48xf32> to vector<2x32xf32>
    %641 = vector.extract_strided_slice %634 {offsets = [0, 0], sizes = [2, 32], strides = [1, 1]} : vector<2x48xf32> to vector<2x32xf32>
    %642 = arith.addf %640, %641 : vector<2x32xf32>
    %643 = arith.negf %642 : vector<2x32xf32>
    %644 = math.exp %643 : vector<2x32xf32>
    %cst_113 = arith.constant 1.000000e+00 : f32
    %645 = vector.broadcast %cst_113 : f32 to vector<2x32xf32>
    %646 = arith.addf %645, %644 : vector<2x32xf32>
    %647 = arith.divf %645, %646 : vector<2x32xf32>
    %648 = vector.extract_strided_slice %647 {offsets = [0, 0], sizes = [2, 16], strides = [1, 1]} : vector<2x32xf32> to vector<2x16xf32>
    %649 = vector.extract_strided_slice %647 {offsets = [0, 16], sizes = [2, 16], strides = [1, 1]} : vector<2x32xf32> to vector<2x16xf32>
    %650 = vector.extract_strided_slice %636 {offsets = [0, 32], sizes = [2, 16], strides = [1, 1]} : vector<2x48xf32> to vector<2x16xf32>
    %651 = vector.extract_strided_slice %634 {offsets = [0, 32], sizes = [2, 16], strides = [1, 1]} : vector<2x48xf32> to vector<2x16xf32>
    %652 = arith.mulf %648, %651 : vector<2x16xf32>
    %653 = arith.addf %650, %652 : vector<2x16xf32>
    %654 = math.tanh %653 : vector<2x16xf32>
    %cst_114 = arith.constant 1.000000e+00 : f32
    %655 = vector.broadcast %cst_114 : f32 to vector<2x16xf32>
    %656 = arith.subf %655, %649 : vector<2x16xf32>
    %657 = arith.mulf %656, %654 : vector<2x16xf32>
    %658 = arith.mulf %649, %638 : vector<2x16xf32>
    %659 = arith.addf %657, %658 : vector<2x16xf32>
    %660 = vector.extract_strided_slice %637 {offsets = [0, 0], sizes = [2, 32], strides = [1, 1]} : vector<2x48xf32> to vector<2x32xf32>
    %661 = vector.extract_strided_slice %635 {offsets = [0, 0], sizes = [2, 32], strides = [1, 1]} : vector<2x48xf32> to vector<2x32xf32>
    %662 = arith.addf %660, %661 : vector<2x32xf32>
    %663 = arith.negf %662 : vector<2x32xf32>
    %664 = math.exp %663 : vector<2x32xf32>
    %cst_115 = arith.constant 1.000000e+00 : f32
    %665 = vector.broadcast %cst_115 : f32 to vector<2x32xf32>
    %666 = arith.addf %665, %664 : vector<2x32xf32>
    %667 = arith.divf %665, %666 : vector<2x32xf32>
    %668 = vector.extract_strided_slice %667 {offsets = [0, 0], sizes = [2, 16], strides = [1, 1]} : vector<2x32xf32> to vector<2x16xf32>
    %669 = vector.extract_strided_slice %667 {offsets = [0, 16], sizes = [2, 16], strides = [1, 1]} : vector<2x32xf32> to vector<2x16xf32>
    %670 = vector.extract_strided_slice %637 {offsets = [0, 32], sizes = [2, 16], strides = [1, 1]} : vector<2x48xf32> to vector<2x16xf32>
    %671 = vector.extract_strided_slice %635 {offsets = [0, 32], sizes = [2, 16], strides = [1, 1]} : vector<2x48xf32> to vector<2x16xf32>
    %672 = arith.mulf %668, %671 : vector<2x16xf32>
    %673 = arith.addf %670, %672 : vector<2x16xf32>
    %674 = math.tanh %673 : vector<2x16xf32>
    %cst_116 = arith.constant 1.000000e+00 : f32
    %675 = vector.broadcast %cst_116 : f32 to vector<2x16xf32>
    %676 = arith.subf %675, %669 : vector<2x16xf32>
    %677 = arith.mulf %676, %674 : vector<2x16xf32>
    %678 = arith.mulf %669, %639 : vector<2x16xf32>
    %679 = arith.addf %677, %678 : vector<2x16xf32>
    %c7_i32_117 = arith.constant 7 : i32
    %680 = vector.broadcast %c7_i32_117 : i32 to vector<2x1xi32>
    %681 = arith.cmpi sgt, %2, %680 : vector<2x1xi32>
    %c0_i32_118 = arith.constant 0 : i32
    %682 = vector.broadcast %c0_i32_118 : i32 to vector<2x1xi32>
    %683 = arith.cmpi sgt, %2, %682 : vector<2x1xi32>
    %684 = vector.broadcast %18 : vector<1x16xf32> to vector<2x16xf32>
    %685 = arith.mulf %659, %684 : vector<2x16xf32>
    %cst_119 = arith.constant dense<0.000000e+00> : vector<2xf32>
    %686 = vector.multi_reduction <add>, %685, %cst_119 [1] : vector<2x16xf32> to vector<2xf32>
    %687 = vector.shape_cast %686 : vector<2xf32> to vector<2x1xf32>
    %cst_120 = arith.constant 0.000000e+00 : f32
    %688 = vector.broadcast %cst_120 : f32 to vector<2x1xf32>
    %689 = arith.select %681, %687, %688 : vector<2x1xi1>, vector<2x1xf32>
    %690 = vector.broadcast %19 : vector<1x16xf32> to vector<2x16xf32>
    %691 = arith.mulf %679, %690 : vector<2x16xf32>
    %cst_121 = arith.constant dense<0.000000e+00> : vector<2xf32>
    %692 = vector.multi_reduction <add>, %691, %cst_121 [1] : vector<2x16xf32> to vector<2xf32>
    %693 = vector.shape_cast %692 : vector<2xf32> to vector<2x1xf32>
    %cst_122 = arith.constant 0.000000e+00 : f32
    %694 = vector.broadcast %cst_122 : f32 to vector<2x1xf32>
    %695 = arith.select %683, %693, %694 : vector<2x1xi1>, vector<2x1xf32>
    %c7_i32_123 = arith.constant 7 : i32
    %696 = vector.broadcast %c7_i32_123 : i32 to vector<2x8xi32>
    %697 = arith.cmpi eq, %3, %696 : vector<2x8xi32>
    %cst_124 = arith.constant 0.000000e+00 : f32
    %698 = vector.shape_cast %689 : vector<2x1xf32> to vector<2x1xf32>
    %699 = vector.broadcast %698 : vector<2x1xf32> to vector<2x8xf32>
    %700 = vector.broadcast %cst_124 : f32 to vector<2x8xf32>
    %701 = arith.select %697, %699, %700 : vector<2x8xi1>, vector<2x8xf32>
    %702 = arith.addf %623, %701 : vector<2x8xf32>
    %c0_i32_125 = arith.constant 0 : i32
    %703 = vector.broadcast %c0_i32_125 : i32 to vector<2x8xi32>
    %704 = arith.cmpi eq, %3, %703 : vector<2x8xi32>
    %cst_126 = arith.constant 0.000000e+00 : f32
    %705 = vector.shape_cast %695 : vector<2x1xf32> to vector<2x1xf32>
    %706 = vector.broadcast %705 : vector<2x1xf32> to vector<2x8xf32>
    %707 = vector.broadcast %cst_126 : f32 to vector<2x8xf32>
    %708 = arith.select %704, %706, %707 : vector<2x8xi1>, vector<2x8xf32>
    %709 = arith.addf %702, %708 : vector<2x8xf32>
    %710 = vector.shape_cast %709 : vector<2x8xf32> to vector<1x2x8xf32>
    %cst_127 = arith.constant dense<0xFF800000> : vector<1xf32>
    %711 = vector.multi_reduction <maximumf>, %710, %cst_127 [1, 2] : vector<1x2x8xf32> to vector<1xf32>
    %712 = vector.shape_cast %711 : vector<1xf32> to vector<1x1x1xf32>
    %713 = vector.extract %712[0, 0, 0] : f32 from vector<1x1x1xf32>
    %714 = vector.broadcast %713 : f32 to vector<2x8xf32>
    %715 = arith.subf %709, %714 : vector<2x8xf32>
    %716 = math.exp %715 : vector<2x8xf32>
    %717 = arith.mulf %716, %7 : vector<2x8xf32>
    %cst_128 = arith.constant dense<0.000000e+00> : vector<2xf32>
    %718 = vector.multi_reduction <add>, %717, %cst_128 [1] : vector<2x8xf32> to vector<2xf32>
    %719 = vector.shape_cast %718 : vector<2xf32> to vector<2x1xf32>
    %cst_129 = arith.constant 9.99999974E-6 : f32
    %720 = vector.broadcast %cst_129 : f32 to vector<2x1xf32>
    %721 = arith.maximumf %719, %720 : vector<2x1xf32>
    %722 = vector.broadcast %721 : vector<2x1xf32> to vector<2x8xf32>
    %723 = arith.divf %717, %722 : vector<2x8xf32>
    %cst_130 = arith.constant 0.000000e+00 : f32
    %724 = vector.broadcast %cst_130 : f32 to vector<2x32xf32>
    %725 = vector.extract_strided_slice %23 {offsets = [0, 0], sizes = [2, 32], strides = [1, 1]} : vector<16x32xf32> to vector<2x32xf32>
    %726 = vector.extract_strided_slice %723 {offsets = [0, 0], sizes = [2, 1], strides = [1, 1]} : vector<2x8xf32> to vector<2x1xf32>
    %727 = vector.broadcast %726 : vector<2x1xf32> to vector<2x32xf32>
    %728 = arith.mulf %725, %727 : vector<2x32xf32>
    %729 = arith.addf %724, %728 : vector<2x32xf32>
    %730 = vector.extract_strided_slice %23 {offsets = [2, 0], sizes = [2, 32], strides = [1, 1]} : vector<16x32xf32> to vector<2x32xf32>
    %731 = vector.extract_strided_slice %723 {offsets = [0, 1], sizes = [2, 1], strides = [1, 1]} : vector<2x8xf32> to vector<2x1xf32>
    %732 = vector.broadcast %731 : vector<2x1xf32> to vector<2x32xf32>
    %733 = arith.mulf %730, %732 : vector<2x32xf32>
    %734 = arith.addf %729, %733 : vector<2x32xf32>
    %735 = vector.extract_strided_slice %23 {offsets = [4, 0], sizes = [2, 32], strides = [1, 1]} : vector<16x32xf32> to vector<2x32xf32>
    %736 = vector.extract_strided_slice %723 {offsets = [0, 2], sizes = [2, 1], strides = [1, 1]} : vector<2x8xf32> to vector<2x1xf32>
    %737 = vector.broadcast %736 : vector<2x1xf32> to vector<2x32xf32>
    %738 = arith.mulf %735, %737 : vector<2x32xf32>
    %739 = arith.addf %734, %738 : vector<2x32xf32>
    %740 = vector.extract_strided_slice %23 {offsets = [6, 0], sizes = [2, 32], strides = [1, 1]} : vector<16x32xf32> to vector<2x32xf32>
    %741 = vector.extract_strided_slice %723 {offsets = [0, 3], sizes = [2, 1], strides = [1, 1]} : vector<2x8xf32> to vector<2x1xf32>
    %742 = vector.broadcast %741 : vector<2x1xf32> to vector<2x32xf32>
    %743 = arith.mulf %740, %742 : vector<2x32xf32>
    %744 = arith.addf %739, %743 : vector<2x32xf32>
    %745 = vector.extract_strided_slice %23 {offsets = [8, 0], sizes = [2, 32], strides = [1, 1]} : vector<16x32xf32> to vector<2x32xf32>
    %746 = vector.extract_strided_slice %723 {offsets = [0, 4], sizes = [2, 1], strides = [1, 1]} : vector<2x8xf32> to vector<2x1xf32>
    %747 = vector.broadcast %746 : vector<2x1xf32> to vector<2x32xf32>
    %748 = arith.mulf %745, %747 : vector<2x32xf32>
    %749 = arith.addf %744, %748 : vector<2x32xf32>
    %750 = vector.extract_strided_slice %23 {offsets = [10, 0], sizes = [2, 32], strides = [1, 1]} : vector<16x32xf32> to vector<2x32xf32>
    %751 = vector.extract_strided_slice %723 {offsets = [0, 5], sizes = [2, 1], strides = [1, 1]} : vector<2x8xf32> to vector<2x1xf32>
    %752 = vector.broadcast %751 : vector<2x1xf32> to vector<2x32xf32>
    %753 = arith.mulf %750, %752 : vector<2x32xf32>
    %754 = arith.addf %749, %753 : vector<2x32xf32>
    %755 = vector.extract_strided_slice %23 {offsets = [12, 0], sizes = [2, 32], strides = [1, 1]} : vector<16x32xf32> to vector<2x32xf32>
    %756 = vector.extract_strided_slice %723 {offsets = [0, 6], sizes = [2, 1], strides = [1, 1]} : vector<2x8xf32> to vector<2x1xf32>
    %757 = vector.broadcast %756 : vector<2x1xf32> to vector<2x32xf32>
    %758 = arith.mulf %755, %757 : vector<2x32xf32>
    %759 = arith.addf %754, %758 : vector<2x32xf32>
    %760 = vector.extract_strided_slice %23 {offsets = [14, 0], sizes = [2, 32], strides = [1, 1]} : vector<16x32xf32> to vector<2x32xf32>
    %761 = vector.extract_strided_slice %723 {offsets = [0, 7], sizes = [2, 1], strides = [1, 1]} : vector<2x8xf32> to vector<2x1xf32>
    %762 = vector.broadcast %761 : vector<2x1xf32> to vector<2x32xf32>
    %763 = arith.mulf %760, %762 : vector<2x32xf32>
    %764 = arith.addf %759, %763 : vector<2x32xf32>
    %c0_131 = arith.constant 0 : index
    %c0_132 = arith.constant 0 : index
    %765 = vector.load %arg6[%c0_131, %c0_132] : memref<2x32xf32, #tpu.memory_space<vmem>>, vector<2x32xf32>
    tpu.vector_store %arg6[%c0_131, %c0_132], %764 {strides = array<i32>} : memref<2x32xf32, #tpu.memory_space<vmem>>, vector<2x32xf32>,
    return
  }
}

</mosaic_0001>

<bundles_post_ra>
// kernel: tpu_custom_call.1
= control target key start
LH: loop header
LB: loop body
LE: loop exit
PB: predicated region body
PF: predicated region fallthrough
CT: control target
= control target key end

     0   :  { %11 = vsyncpa [#allocation3], 0  ;;  %s3139_s0 = inlined_call_operand.hbm [shape: f32[16,16], index: 0, kind: input, shape index: {}]   ;;  %s3140_s1 = inlined_call_operand.vmem [shape: s32[2,1], index: 1, kind: input, shape index: {}]   ;;  %s3141_s2 = inlined_call_operand.hbm [shape: f32[17,32], index: 2, kind: input, shape index: {}]   ;;  %s3142_s3 = inlined_call_operand.hbm [shape: f32[33,96], index: 3, kind: input, shape index: {}]   ;;  %s3143_s4 = inlined_call_operand.hbm [shape: f32[33,96], index: 4, kind: input, shape index: {}]   ;;  %s3144_s5 = inlined_call_operand.vmem [shape: f32[1,32], index: 5, kind: input, shape index: {}]   ;;  %s3145_s6 = inlined_call_operand.hbm [shape: f32[2,32], index: 6, kind: output, shape index: {}]  }
   0x1   :  { %12 = vsyncpa [#allocation6], 0 }
   0x2   :  { %13 = vsyncpa [#allocation9], 0 }
   0x3   :  { %14 = vsyncpa [#allocation4], 0  ;;  %s2460_s21 = smov [#allocation5]   ;;  %s2461_s23 = smov [#allocation2]  }
   0x4   :  { %s34_s22 = sshll.u32 %s2460_s21, 4  ;;  %s20_s24 = sshll.u32 %s2461_s23, 4  ;;  %s35_s22 = int_to_ptr.vmem [resolvable:$true] %s34_s22  ;;  %s2520_s24 = int_to_ptr.vmem [resolvable:$true] %s20_s24 }
   0x5   :  { %s2342_s27 = scalar_lea.hbm %s3141_s2, 384 }
   0x6   :  { %p2343_p0 = scmp.ne.s32.totalorder %s3141_s2, %s2342_s27  ;;  %p2346_p1 = scmp.lt.u32.totalorder %s2342_s27, %s3141_s2 }
   0x8   :  { %p2348_p2 = pnand %p2346_p1, %p2343_p0 }
   0xa   :  { %2351 = shalt.err (!%p2348_p2)
}
   0xb   :  { %s2352_s8 = scalar_lea.vmem %s35_s22, 384  ;;  %p2357_p4 = scmp.lt.s32.totalorder %s35_s22, %s35_s22 }
   0xc   :  { %p2353_p3 = scmp.ne.s32.totalorder %s35_s22, %s2352_s8  ;;  %p2358_p5 = scmp.lt.s32.totalorder %s2352_s8, %s2352_s8 }
   0xe   :  { %p2359_p6 = por %p2358_p5, %p2357_p4 }
  0x10   :  { %p2360_p7 = pnand %p2359_p6, %p2353_p3 }
  0x12   :  { %2363 = shalt.err (!%p2360_p7)
}
  0x13   :  { %s2462_s9 = smov 128   ;;  %s2463_s10 = smov 8  }
  0x14   :  { %40 = dma.hbm_to_vmem [thread:$0]  %s3141_s2, 384, %s35_s22, [#allocation6], %s2462_s9, %s2462_s9, %s2463_s10  }
  0x15   :  { %s2364_s15 = scalar_lea.hbm %s3139_s0, 256 }
  0x16   :  { %p2365_p8 = scmp.ne.s32.totalorder %s3139_s0, %s2364_s15  ;;  %p2368_p9 = scmp.lt.u32.totalorder %s2364_s15, %s3139_s0 }
  0x18   :  { %p2370_p10 = pnand %p2368_p9, %p2365_p8 }
  0x1a   :  { %2373 = shalt.err (!%p2370_p10)
}
  0x1b   :  { %s2374_s20 = scalar_lea.vmem %s2520_s24, 256  ;;  %p2379_p12 = scmp.lt.s32.totalorder %s2520_s24, %s2520_s24 }
  0x1c   :  { %p2375_p11 = scmp.ne.s32.totalorder %s2520_s24, %s2374_s20  ;;  %p2380_p13 = scmp.lt.s32.totalorder %s2374_s20, %s2374_s20 }
  0x1e   :  { %p2381_p0 = por %p2380_p13, %p2379_p12 }
  0x20   :  { %p2382_p1 = pnand %p2381_p0, %p2375_p11 }
  0x22   :  { %2385 = shalt.err (!%p2382_p1)
}
  0x23   :  { %26 = dma.hbm_to_vmem [thread:$0]  %s3139_s0, 256, %s2520_s24, [#allocation3], %s2462_s9, %s2462_s9, %s2463_s10  }
  0x24   :  { %s2464_s22 = smov [#allocation7]   ;;  %s2465_s25 = smov [#allocation8]  }
  0x25   :  { %s46_s23 = sshll.u32 %s2464_s22, 4  ;;  %s58_s26 = sshll.u32 %s2465_s25, 4  ;;  %s47_s23 = int_to_ptr.vmem [resolvable:$true] %s46_s23  ;;  %s2557_s26 = int_to_ptr.vmem [resolvable:$true] %s58_s26 }
  0x26   :  { %s2386_s29 = scalar_lea.hbm %s3142_s3, 640 }
  0x27   :  { %p2387_p2 = scmp.ne.s32.totalorder %s3142_s3, %s2386_s29  ;;  %p2390_p3 = scmp.lt.u32.totalorder %s2386_s29, %s3142_s3 }
  0x29   :  { %p2392_p4 = pnand %p2390_p3, %p2387_p2 }
  0x2b   :  { %2395 = shalt.err (!%p2392_p4)
}
  0x2c   :  { %s2396_s0 = scalar_lea.vmem %s47_s23, 640  ;;  %p2401_p6 = scmp.lt.s32.totalorder %s47_s23, %s47_s23 }
  0x2d   :  { %p2397_p5 = scmp.ne.s32.totalorder %s47_s23, %s2396_s0  ;;  %p2402_p7 = scmp.lt.s32.totalorder %s2396_s0, %s2396_s0 }
  0x2f   :  { %p2403_p8 = por %p2402_p7, %p2401_p6 }
  0x31   :  { %p2404_p9 = pnand %p2403_p8, %p2397_p5 }
  0x33   :  { %2407 = shalt.err (!%p2404_p9)
}
  0x34   :  { %52 = dma.hbm_to_vmem [thread:$0]  %s3142_s3, 640, %s47_s23, [#allocation6], %s2462_s9, %s2462_s9, %s2463_s10  }
  0x35   :  { %s2408_s15 = scalar_lea.hbm %s3143_s4, 640 }
  0x36   :  { %p2409_p10 = scmp.ne.s32.totalorder %s3143_s4, %s2408_s15  ;;  %p2412_p11 = scmp.lt.u32.totalorder %s2408_s15, %s3143_s4 }
  0x38   :  { %p2414_p12 = pnand %p2412_p11, %p2409_p10 }
  0x3a   :  { %2417 = shalt.err (!%p2414_p12)
}
  0x3b   :  { %s2418_s20 = scalar_lea.vmem %s2557_s26, 640  ;;  %p2423_p0 = scmp.lt.s32.totalorder %s2557_s26, %s2557_s26 }
  0x3c   :  { %p2419_p13 = scmp.ne.s32.totalorder %s2557_s26, %s2418_s20  ;;  %p2424_p1 = scmp.lt.s32.totalorder %s2418_s20, %s2418_s20 }
  0x3e   :  { %p2425_p2 = por %p2424_p1, %p2423_p0 }
  0x40   :  { %p2426_p3 = pnand %p2425_p2, %p2419_p13 }
  0x42   :  { %2429 = shalt.err (!%p2426_p3)
}
  0x43   :  { %64 = dma.hbm_to_vmem [thread:$0]  %s3143_s4, 640, %s2557_s26, [#allocation9], %s2462_s9, %s2462_s9, %s2463_s10  }
  0x44   :  { %2452 = dma.done.wait [#allocation3], 256  }
  0x45   :  { %2453 = vsyncadd [#allocation3], 4294967040 }
  0x46   :  { %2454 = dma.done.wait [#allocation6], 1024  }
  0x47   :  { %2455 = vsyncadd [#allocation6], 4294966272 }
  0x48   :  { %2456 = dma.done.wait [#allocation9], 640  }
  0x49   :  { %2457 = vsyncadd [#allocation9], 4294966656  ;;  %vm110_vm0 = vcmask 130048   ;;  %v90_v0 = vld [vmem:[#allocation5] sm:$0xff]  ;;  %v91_v1 = vld [vmem:[#allocation5 + $0x8] sm:$0xff]  ;;  %v2466_v11 = vmov 0.0|0.0  }
  0x4a   :  { %v104_v2 = vld [vmem:[#allocation2] sm:$0xff]  ;;  %v2143_v3 = vpack.c.bf16 %v91_v1, %v90_v0  ;;  %v98_v4 = vld [vmem:[#allocation8] sm:$0xff]  ;;  %v99_v5 = vld [vmem:[#allocation8 + $0x8] sm:$0xff]  ;;  %vm2467_vm1 = vmmov 0   ;;  %v2468_v15 = vmov 0.0   ;;  %vm196_vm2 = vcmask 261120  }
  0x4b   :  { %2041 = vmatprep.mubr.msk.f32.mxu0 %vm110_vm0, %v104_v2  ;;  %v93_v6 = vld [vmem:[#allocation7] sm:$0xff]  ;;  %v94_v7 = vld [vmem:[#allocation7 + $0x8] sm:$0xff]  ;;  %v2595_v9 = vpack.c.bf16 %v99_v5, %v98_v4  ;;  %v100_v12 = vld [vmem:[#allocation8 + $0x10] sm:$0xff]  ;;  %s2469_s4 = smov 96   ;;  %v2470_v29 = vmov 0   ;;  %s2471_s21 = smov 32  }
  0x4c   :  { %2144 = vmatprep.subr.bf16.mxu0 %v2143_v3  ;;  %v105_v8 = vld [vmem:[#allocation2 + $0x8] sm:$0xff]  ;;  %v2147_v10 = vpack.c.bf16 %v94_v7, %v93_v6  ;;  %v95_v16 = vld [vmem:[#allocation7 + $0x10] sm:$0xff]  ;;  %v96_v17 = vld [vmem:[#allocation7 + $0x18] sm:$0xff]  ;;  %2230 = vset.pattern.permute.xlu1 %v2470_v29  ;;  %s2472_s22 = smov 112   ;;  %s2473_s23 = smov 64  }
  0x4d   :  { %2146 = vmatpush3.bf16.msra.mxu0 %v2143_v3  ;;  %v101_v13 = vld [vmem:[#allocation8 + $0x18] sm:$0xff]  ;;  %v2151_v18 = vpack.c.bf16 %v96_v17, %v95_v16  ;;  %v1956_v19 = vld [vmem:[#allocation5 + $0x10] ss:$0 sm:$0xff]  ;;  %v2623_v24 = vld [vmem:[#allocation8 + $0x20] ss:$0 sm:$0xff]  ;;  %2231 = vset.pattern.permute.xlu0 %v2470_v29  ;;  %s2474_s25 = smov 16  }
  0x4e   :  { %2155 = vmatprep.subr.bf16.mxu0 %v2466_v11  ;;  %2148 = vmatprep.subr.bf16.mxu1 %v2147_v10  ;;  %v2600_v14 = vpack.c.bf16 %v101_v13, %v100_v12  ;;  %v1959_v30 = vld [vmem:[#allocation7 + $0x20] ss:$0 sm:$0xff]  ;;  %v79_v43 = vld [vmem:[%s3140_s1] sm:$0x3]  ;;  %s2475_s26 = smov 48   ;;  %s2476_s27 = smov 80  }
  0x4f   :  { %2150 = vmatpush3.bf16.msra.mxu1 %v2147_v10  ;;  %vm80_vm3 = vcmp.gt.s32.totalorder %v79_v43, 1  ;;  %s2484_s7 = smov [#allocation10]  }
  0x50   :  { %2042 = vmatmul.mubr.msk.f32.vlgmr.msra.gmra.mrb[0].mxu0 %vm110_vm0, %v105_v8  ;;  %2152 = vmatprep.subr.bf16.mxu1 %v2151_v18  ;;  %v2645_v48 = vsel %vm80_vm3, %v79_v43, 1  ;;  %s1944_s8 = sshll.u32 %s2484_s7, 4  ;;  %s1945_s8 = int_to_ptr.vmem [resolvable:$true] %s1944_s8 }
  0x51   :  { %2157 = vmatpush3.bf16.msra.mxu0 %v2595_v9  ;;  %2063 = vmatprep.mubr.msk.f32.mxu0 %vm2467_vm1, %v2468_v15  ;;  %vm408_vm4 = vcmp.gt.s32.totalorder %v2645_v48, 0  ;;  %vm409_vm5 = vcmp.gt.s32.totalorder %v2645_v48, 7  ;;  %vm623_vm8 = vcmp.gt.s32.totalorder %v2645_v48, 6  ;;  %vm622_vm9 = vcmp.gt.s32.totalorder %v2645_v48, 1  ;;  %s2430_s11 = scalar_lea.vmem %s1945_s8, 32  ;;  %p2435_p5 = scmp.lt.s32.totalorder %s1945_s8, %s1945_s8 }
  0x52   :  { %2158 = vmatprep.subr.bf16.mxu0 %v2466_v11  ;;  %v460_v51 = vsel %vm408_vm4, 1, %v2470_v29  ;;  %v466_v57 = vsel %vm409_vm5, 1, %v2470_v29  ;;  %vm833_vm12 = vcmp.gt.s32.totalorder %v2645_v48, 5  ;;  %vm832_vm13 = vcmp.gt.s32.totalorder %v2645_v48, 2  ;;  %p2431_p4 = scmp.ne.s32.totalorder %s1945_s8, %s2430_s11  ;;  %p2436_p6 = scmp.lt.s32.totalorder %s2430_s11, %s2430_s11 }
  0x53   :  { %2154 = vmatpush3.bf16.msra.mxu1 %v2151_v18  ;;  %vm1038_vm3 = vcmp.gt.s32.totalorder %v2645_v48, 4 }
  0x54   :  { %2161 = vmatprep.subr.bf16.mxu1 %v2466_v11  ;;  %p2437_p7 = por %p2436_p6, %p2435_p5 }
  0x55   :  { %2160 = vmatpush3.bf16.msra.mxu0 %v2600_v14 }
  0x56   :  { %2167 = vmatprep.subr.bf16.mxu0 %v2466_v11  ;;  %p2438_p8 = pnand %p2437_p7, %p2431_p4 }
  0x58   :  { %2064 = vmatmul.mubr.f32.vlgmr.msra.gmra.mrb[2].mxu0 %v2468_v15 }
  0x59   :  { %2169 = vmatpush3.bf16.msra.mxu0 %v2595_v9  ;;  %2085 = vmatprep.mubr.msk.f32.mxu0 %vm2467_vm1, %v2468_v15 }
  0x5a   :  { %2170 = vmatprep.subr.bf16.mxu0 %v2466_v11 }
  0x5d   :  { %2172 = vmatpush3.bf16.msra.mxu0 %v2600_v14 }
  0x5e   :  { %2179 = vmatprep.subr.bf16.mxu0 %v2466_v11 }
 0x123   :  { %v2043_v20 = vpop.f32.mrb[0].mxu0 }
 0x124   :  { %v183_v21 = vpop.f32.mrb[1].mxu0  ;;  %v2617_v23 = vadd.f32 %v2043_v20, %v1956_v19 }
 0x125   :  { %v2615_v22 = vadd.f32 %v1956_v19, %v183_v21 }
 0x127   :  { %2052 = vmatprep.mubr.msk.f32.mxu1 %vm196_vm2, %v2615_v22 }
 0x128   :  { %2053 = vmatmul.mubr.msk.f32.vlgmr.msra.gmra.mrb[0].mxu1 %vm196_vm2, %v2617_v23 }
 0x129   :  { %2163 = vmatpush3.bf16.msra.mxu1 %v2595_v9  ;;  %2074 = vmatprep.mubr.msk.f32.mxu1 %vm2467_vm1, %v2468_v15 }
 0x12a   :  { %2164 = vmatprep.subr.bf16.mxu1 %v2466_v11 }
 0x12b   :  { %v351_v25 = vpop.f32.mrb[2].mxu0 }
 0x12c   :  { %v352_v26 = vadd.f32 %v2623_v24, %v351_v25  ;;  %v2065_v27 = vpop.f32.mrb[3].mxu0 }
 0x12d   :  { %2166 = vmatpush3.bf16.msra.mxu1 %v2600_v14 }
 0x12e   :  { %v381_v28 = vrot.slane %v352_v26, 2  ;;  %2173 = vmatprep.subr.bf16.mxu1 %v2466_v11 }
 0x130   :  { %390 = vrot.lane.b32.xlu0 %v381_v28, %s2469_s4 }
 0x134   :  { %363 = vrot.lane.b32.xlu0 %v352_v26, %s2469_s4 }
 0x1a2   :  { %v391_v44 = vpop.permute.xlu0 %390 }
 0x1a6   :  { %v364_v49 = vpop.permute.xlu0 %363 }
 0x1fb   :  { %v2054_v31 = vpop.f32.mrb[0].mxu1 }
 0x1fc   :  { %v2636_v32 = vadd.f32 %v2054_v31, %v1959_v30  ;;  %v269_v33 = vpop.f32.mrb[1].mxu1 }
 0x1fd   :  { %v2638_v34 = vadd.f32 %v1959_v30, %v269_v33 }
 0x1fe   :  { %v383_v35 = vadd.f32 %v381_v28, %v2636_v32 }
 0x1ff   :  { %v355_v36 = vadd.f32 %v352_v26, %v2638_v34 }
 0x200   :  { %v1964_v37 = vmul.f32 -1.442695, %v383_v35 }
 0x201   :  { %v1963_v38 = vmul.f32 -1.442695, %v355_v36 }
 0x202   :  { %2240 = vpow2.f32 %v1964_v37 }
 0x203   :  { %2242 = vpow2.f32 %v1963_v38 }
 0x20c   :  { %v2241_v39 = vpop.eup %2240 }
 0x20d   :  { %v2243_v40 = vpop.eup %2242  ;;  %v387_v41 = vadd.f32 1.0, %v2241_v39 }
 0x20e   :  { %v359_v42 = vadd.f32 1.0, %v2243_v40 }
 0x20f   :  { %2244 = vrcp.f32 %v387_v41 }
 0x210   :  { %2246 = vrcp.f32 %v359_v42 }
 0x219   :  { %v2245_v45 = vpop.eup %2244 }
 0x21a   :  { %v393_v46 = vmul.f32 %v2245_v45, %v391_v44  ;;  %v2247_v47 = vpop.eup %2246  ;;  %v400_v60 = vsub.f32 1.0, %v2245_v45  ;;  %v406_v62 = vmul.f32 0.0, %v2245_v45 }
 0x21b   :  { %v366_v50 = vmul.f32 %v2247_v47, %v364_v49  ;;  %v373_v1 = vsub.f32 1.0, %v2247_v47  ;;  %v379_v5 = vmul.f32 0.0, %v2247_v47 }
 0x21c   :  { %395 = vrot.lane.b32.xlu1 %v393_v46, %s2471_s21 }
 0x220   :  { %368 = vrot.lane.b32.xlu1 %v366_v50, %s2471_s21 }
 0x224   :  { %462 = vperm.xlu1 %2230, %v460_v51   ;;  %v677_v51 = vsel %vm623_vm8, 1, %v2470_v29 }
 0x28e   :  { %v396_v52 = vpop.permute.xlu1 %395 }
 0x28f   :  { %v398_v53 = vadd.f32 %v396_v52, %v2636_v32 }
 0x291   :  { %2248 = vtanh.f32 %v398_v53 }
 0x292   :  { %v369_v54 = vpop.permute.xlu1 %368 }
 0x293   :  { %v371_v55 = vadd.f32 %v369_v54, %v2638_v34 }
 0x295   :  { %2250 = vtanh.f32 %v371_v55 }
 0x29b   :  { %v2249_v56 = vpop.eup %2248 }
 0x29c   :  { %402 = vrot.lane.b32.xlu0 %v2249_v56, %s2472_s22 }
 0x29f   :  { %v2251_v58 = vpop.eup %2250 }
 0x2a0   :  { %375 = vrot.lane.b32.xlu1 %v2251_v58, %s2472_s22  ;;  %468 = vperm.xlu0 %2231, %v466_v57  }
 0x2a3   :  { %v463_v59 = vpop.permute.xlu1 %462 }
 0x2a4   :  { %vm464_vm6 = vcmp.eq.s32.totalorder %v463_v59, 1 }
 0x30e   :  { %v403_v61 = vpop.permute.xlu0 %402 }
 0x30f   :  { %v405_v63 = vmul.f32 %v403_v61, %v400_v60  ;;  %v666_v60 = vsel %vm622_vm9, 1, %v2470_v29 }
 0x311   :  { %v2661_v0 = vadd.f32 %v406_v62, %v405_v63 }
 0x312   :  { %v376_v2 = vpop.permute.xlu1 %375 }
 0x313   :  { %v378_v3 = vmul.f32 %v376_v2, %v373_v1  ;;  %v472_v4 = vrot.slane %v2661_v0, 6 }
 0x315   :  { %473 = vrot.lane.b32.xlu1 %v472_v4, %s2473_s23  ;;  %v2665_v6 = vadd.f32 %v379_v5, %v378_v3 }
 0x317   :  { %v465_v7 = vsel %vm464_vm6, %v2665_v6, 0.0  ;;  %vm3146_vm6 = vcmp.gt.s32.totalorder %v2645_v48, 3 }
 0x318   :  { %478 = vrot.lane.b32.xlu0 %v465_v7, %s2472_s22 }
 0x31f   :  { %v469_v8 = vpop.permute.xlu0 %468 }
 0x320   :  { %vm470_vm7 = vcmp.eq.s32.totalorder %v469_v8, 1 }
 0x387   :  { %v474_v10 = vpop.permute.xlu1 %473 }
 0x388   :  { %v476_v12 = vsel %vm470_vm7, %v474_v10, 0.0 }
 0x389   :  { %482 = vrot.lane.b32.xlu1 %v476_v12, %s2474_s25 }
 0x38a   :  { %v479_v13 = vpop.permute.xlu0 %478 }
 0x3fb   :  { %v483_v16 = vpop.permute.xlu1 %482 }
 0x3fc   :  { %v2671_v17 = vsel %vm110_vm0, %v479_v13, %v483_v16 }
 0x3fd   :  { %2075 = vmatmul.mubr.msk.f32.vlgmr.msra.gmra.mrb[2].mxu1 %vm196_vm2, %v2671_v17  ;;  %v616_v43 = vrot.slane %v2671_v17, 4  ;;  %v585_v52 = vrot.slane %v2671_v17, 6 }
 0x3fe   :  { %2175 = vmatpush3.bf16.msra.mxu1 %v2595_v9  ;;  %2096 = vmatprep.mubr.msk.f32.mxu1 %vm2467_vm1, %v2468_v15 }
 0x3ff   :  { %2176 = vmatprep.subr.bf16.mxu1 %v2466_v11 }
 0x402   :  { %2178 = vmatpush3.bf16.msra.mxu1 %v2600_v14 }
 0x403   :  { %2185 = vmatprep.subr.bf16.mxu1 %v2466_v11 }
 0x4d0   :  { %v555_v18 = vpop.f32.mrb[2].mxu1 }
 0x4d1   :  { %v556_v19 = vadd.f32 %v2623_v24, %v555_v18  ;;  %v2076_v20 = vpop.f32.mrb[3].mxu1 }
 0x4d3   :  { %v560_v21 = vrot.slane %v556_v19, 6  ;;  %v591_v25 = vrot.slane %v556_v19, 4 }
 0x4d5   :  { %600 = vrot.lane.b32.xlu0 %v591_v25, %s2469_s4  ;;  %569 = vrot.lane.b32.xlu1 %v560_v21, %s2469_s4  ;;  %v562_v26 = vadd.f32 %v560_v21, %v2638_v34  ;;  %v593_v27 = vadd.f32 %v591_v25, %v2636_v32 }
 0x4d7   :  { %v1967_v28 = vmul.f32 -1.442695, %v562_v26  ;;  %v1968_v30 = vmul.f32 -1.442695, %v593_v27 }
 0x4d9   :  { %2252 = vpow2.f32 %v1967_v28 }
 0x4da   :  { %2254 = vpow2.f32 %v1968_v30 }
 0x4e3   :  { %v2253_v31 = vpop.eup %2252 }
 0x4e4   :  { %v2255_v33 = vpop.eup %2254  ;;  %v566_v35 = vadd.f32 1.0, %v2253_v31 }
 0x4e5   :  { %v597_v36 = vadd.f32 1.0, %v2255_v33 }
 0x4e6   :  { %2256 = vrcp.f32 %v566_v35 }
 0x4e7   :  { %2258 = vrcp.f32 %v597_v36 }
 0x4f0   :  { %v2257_v37 = vpop.eup %2256 }
 0x4f1   :  { %v2259_v38 = vpop.eup %2258  ;;  %v579_v63 = vsub.f32 1.0, %v2257_v37 }
 0x4f2   :  { %v610_v54 = vsub.f32 1.0, %v2259_v38 }
 0x547   :  { %v601_v39 = vpop.permute.xlu0 %600  ;;  %v570_v40 = vpop.permute.xlu1 %569 }
 0x548   :  { %v603_v41 = vmul.f32 %v2259_v38, %v601_v39  ;;  %v572_v42 = vmul.f32 %v2257_v37, %v570_v40 }
 0x54a   :  { %605 = vrot.lane.b32.xlu0 %v603_v41, %s2471_s21  ;;  %574 = vrot.lane.b32.xlu1 %v572_v42, %s2471_s21 }
 0x54e   :  { %617 = vrot.lane.b32.xlu1 %v616_v43, %s2475_s26 }
 0x5bc   :  { %v606_v44 = vpop.permute.xlu0 %605  ;;  %v575_v45 = vpop.permute.xlu1 %574 }
 0x5bd   :  { %v608_v46 = vadd.f32 %v606_v44, %v2636_v32  ;;  %v577_v47 = vadd.f32 %v575_v45, %v2638_v34 }
 0x5bf   :  { %2260 = vtanh.f32 %v608_v46 }
 0x5c0   :  { %2262 = vtanh.f32 %v577_v47  ;;  %v618_v53 = vpop.permute.xlu1 %617 }
 0x5c1   :  { %v620_v56 = vmul.f32 %v2259_v38, %v618_v53 }
 0x5c9   :  { %v2261_v49 = vpop.eup %2260 }
 0x5ca   :  { %v2263_v50 = vpop.eup %2262  ;;  %612 = vrot.lane.b32.xlu0 %v2261_v49, %s2472_s22 }
 0x5cb   :  { %581 = vrot.lane.b32.xlu1 %v2263_v50, %s2472_s22 }
 0x5ce   :  { %679 = vperm.xlu0 %2231, %v677_v51  }
 0x5d2   :  { %586 = vrot.lane.b32.xlu0 %v585_v52, %s2474_s25  ;;  %v885_v52 = vsel %vm833_vm12, 1, %v2470_v29 }
 0x5d6   :  { %687 = vrot.lane.b32.xlu0 %v2671_v17, %s2472_s22 }
 0x63c   :  { %v613_v55 = vpop.permute.xlu0 %612 }
 0x63d   :  { %v615_v57 = vmul.f32 %v613_v55, %v610_v54  ;;  %v582_v62 = vpop.permute.xlu1 %581 }
 0x63e   :  { %v584_v2 = vmul.f32 %v582_v62, %v579_v63  ;;  %v874_v63 = vsel %vm832_vm13, 1, %v2470_v29 }
 0x63f   :  { %v2702_v58 = vadd.f32 %v620_v56, %v615_v57 }
 0x641   :  { %v683_v59 = vrot.slane %v2702_v58, 4 }
 0x643   :  { %684 = vrot.lane.b32.xlu1 %v683_v59, %s2473_s23 }
 0x647   :  { %668 = vperm.xlu1 %2230, %v666_v60  }
 0x64d   :  { %v2710_v61 = vpop.permute.xlu0 %679 }
 0x64e   :  { %vm681_vm10 = vcmp.eq.s32.totalorder %v2710_v61, 1 }
 0x651   :  { %v587_v1 = vpop.permute.xlu0 %586 }
 0x652   :  { %v589_v3 = vmul.f32 %v2257_v37, %v587_v1 }
 0x654   :  { %v2712_v4 = vadd.f32 %v589_v3, %v584_v2 }
 0x655   :  { %v688_v7 = vpop.permute.xlu0 %687 }
 0x656   :  { %v672_v5 = vrot.slane %v2712_v4, 2 }
 0x658   :  { %673 = vrot.lane.b32.xlu0 %v672_v5, %s2472_s22 }
 0x6b5   :  { %v685_v8 = vpop.permute.xlu1 %684 }
 0x6b6   :  { %v690_v10 = vsel %vm681_vm10, %v685_v8, %v688_v7 }
 0x6b7   :  { %692 = vrot.lane.b32.xlu1 %v690_v10, %s2474_s25 }
 0x6c6   :  { %v2720_v12 = vpop.permute.xlu1 %668 }
 0x6c7   :  { %vm670_vm11 = vcmp.eq.s32.totalorder %v2720_v12, 1 }
 0x6ca   :  { %v674_v13 = vpop.permute.xlu0 %673 }
 0x6cb   :  { %v676_v16 = vsel %vm670_vm11, %v674_v13, %v2671_v17 }
 0x729   :  { %v693_v18 = vpop.permute.xlu1 %692 }
 0x72a   :  { %v2727_v19 = vsel %vm110_vm0, %v676_v16, %v693_v18 }
 0x72b   :  { %2086 = vmatmul.mubr.msk.f32.vlgmr.msra.gmra.mrb[4].mxu0 %vm196_vm2, %v2727_v19  ;;  %v826_v44 = vrot.slane %v2727_v19, 6  ;;  %v795_v53 = vrot.slane %v2727_v19, 4 }
 0x72c   :  { %2181 = vmatpush3.bf16.msra.mxu0 %v2595_v9  ;;  %2107 = vmatprep.mubr.msk.f32.mxu0 %vm2467_vm1, %v2468_v15 }
 0x72d   :  { %2182 = vmatprep.subr.bf16.mxu0 %v2466_v11 }
 0x730   :  { %2184 = vmatpush3.bf16.msra.mxu0 %v2600_v14 }
 0x731   :  { %2191 = vmatprep.subr.bf16.mxu0 %v2466_v11 }
 0x7fe   :  { %v765_v20 = vpop.f32.mrb[4].mxu0 }
 0x7ff   :  { %v766_v17 = vadd.f32 %v2623_v24, %v765_v20  ;;  %v2087_v21 = vpop.f32.mrb[5].mxu0 }
 0x801   :  { %v770_v25 = vrot.slane %v766_v17, 4  ;;  %v801_v26 = vrot.slane %v766_v17, 6 }
 0x803   :  { %810 = vrot.lane.b32.xlu0 %v801_v26, %s2469_s4  ;;  %779 = vrot.lane.b32.xlu1 %v770_v25, %s2469_s4  ;;  %v772_v27 = vadd.f32 %v770_v25, %v2638_v34  ;;  %v803_v28 = vadd.f32 %v801_v26, %v2636_v32 }
 0x805   :  { %v1970_v30 = vmul.f32 -1.442695, %v772_v27  ;;  %v1971_v31 = vmul.f32 -1.442695, %v803_v28 }
 0x807   :  { %2264 = vpow2.f32 %v1970_v30 }
 0x808   :  { %2266 = vpow2.f32 %v1971_v31 }
 0x811   :  { %v2265_v33 = vpop.eup %2264 }
 0x812   :  { %v2267_v35 = vpop.eup %2266  ;;  %v776_v36 = vadd.f32 1.0, %v2265_v33 }
 0x813   :  { %v807_v37 = vadd.f32 1.0, %v2267_v35 }
 0x814   :  { %2268 = vrcp.f32 %v776_v36 }
 0x815   :  { %2270 = vrcp.f32 %v807_v37 }
 0x81e   :  { %v2269_v38 = vpop.eup %2268 }
 0x81f   :  { %v2271_v39 = vpop.eup %2270  ;;  %v789_v3 = vsub.f32 1.0, %v2269_v38 }
 0x820   :  { %v820_v55 = vsub.f32 1.0, %v2271_v39 }
 0x875   :  { %v811_v40 = vpop.permute.xlu0 %810  ;;  %v780_v41 = vpop.permute.xlu1 %779 }
 0x876   :  { %v813_v42 = vmul.f32 %v2271_v39, %v811_v40  ;;  %v782_v43 = vmul.f32 %v2269_v38, %v780_v41 }
 0x878   :  { %815 = vrot.lane.b32.xlu0 %v813_v42, %s2471_s21  ;;  %784 = vrot.lane.b32.xlu1 %v782_v43, %s2471_s21 }
 0x87c   :  { %827 = vrot.lane.b32.xlu1 %v826_v44, %s2475_s26 }
 0x8ea   :  { %v816_v45 = vpop.permute.xlu0 %815  ;;  %v785_v46 = vpop.permute.xlu1 %784 }
 0x8eb   :  { %v818_v47 = vadd.f32 %v816_v45, %v2636_v32  ;;  %v787_v49 = vadd.f32 %v785_v46, %v2638_v34 }
 0x8ed   :  { %2272 = vtanh.f32 %v818_v47 }
 0x8ee   :  { %2274 = vtanh.f32 %v787_v49  ;;  %v828_v54 = vpop.permute.xlu1 %827  ;;  %v1087_v49 = vsel %vm1038_vm3, 1, %v2470_v29 }
 0x8ef   :  { %v830_v57 = vmul.f32 %v2271_v39, %v828_v54 }
 0x8f7   :  { %v2273_v50 = vpop.eup %2272 }
 0x8f8   :  { %v2275_v51 = vpop.eup %2274  ;;  %822 = vrot.lane.b32.xlu0 %v2273_v50, %s2472_s22 }
 0x8f9   :  { %791 = vrot.lane.b32.xlu1 %v2275_v51, %s2472_s22 }
 0x8fc   :  { %887 = vperm.xlu0 %2231, %v885_v52  }
 0x900   :  { %796 = vrot.lane.b32.xlu0 %v795_v53, %s2474_s25 }
 0x904   :  { %895 = vrot.lane.b32.xlu0 %v2727_v19, %s2472_s22 }
 0x96a   :  { %v823_v56 = vpop.permute.xlu0 %822 }
 0x96b   :  { %v825_v59 = vmul.f32 %v823_v56, %v820_v55  ;;  %v792_v2 = vpop.permute.xlu1 %791 }
 0x96c   :  { %v794_v7 = vmul.f32 %v792_v2, %v789_v3 }
 0x96d   :  { %v2758_v60 = vadd.f32 %v830_v57, %v825_v59  ;;  %v1076_v57 = vsel %vm3146_vm6, 1, %v2470_v29 }
 0x96f   :  { %v891_v62 = vrot.slane %v2758_v60, 2 }
 0x971   :  { %892 = vrot.lane.b32.xlu1 %v891_v62, %s2473_s23 }
 0x975   :  { %876 = vperm.xlu1 %2230, %v874_v63  }
 0x97b   :  { %v2766_v1 = vpop.permute.xlu0 %887 }
 0x97c   :  { %vm889_vm14 = vcmp.eq.s32.totalorder %v2766_v1, 1 }
 0x97f   :  { %v797_v5 = vpop.permute.xlu0 %796 }
 0x980   :  { %v799_v8 = vmul.f32 %v2269_v38, %v797_v5 }
 0x982   :  { %v2768_v10 = vadd.f32 %v799_v8, %v794_v7 }
 0x983   :  { %v896_v16 = vpop.permute.xlu0 %895 }
 0x984   :  { %v880_v13 = vrot.slane %v2768_v10, 4 }
 0x986   :  { %881 = vrot.lane.b32.xlu0 %v880_v13, %s2472_s22 }
 0x9e3   :  { %v893_v18 = vpop.permute.xlu1 %892 }
 0x9e4   :  { %v898_v20 = vsel %vm889_vm14, %v893_v18, %v896_v16 }
 0x9e5   :  { %900 = vrot.lane.b32.xlu1 %v898_v20, %s2474_s25 }
 0x9f4   :  { %v2776_v17 = vpop.permute.xlu1 %876 }
 0x9f5   :  { %vm878_vm15 = vcmp.eq.s32.totalorder %v2776_v17, 1 }
 0x9f8   :  { %v882_v21 = vpop.permute.xlu0 %881 }
 0x9f9   :  { %v884_v25 = vsel %vm878_vm15, %v882_v21, %v2727_v19 }
 0xa57   :  { %v901_v26 = vpop.permute.xlu1 %900 }
 0xa58   :  { %v2783_v27 = vsel %vm110_vm0, %v884_v25, %v901_v26 }
 0xa59   :  { %2097 = vmatmul.mubr.msk.f32.vlgmr.msra.gmra.mrb[4].mxu1 %vm196_vm2, %v2783_v27  ;;  %v1003_v50 = vrot.slane %v2783_v27, 2 }
 0xa5a   :  { %2187 = vmatpush3.bf16.msra.mxu1 %v2595_v9  ;;  %2118 = vmatprep.mubr.msk.f32.mxu1 %vm2467_vm1, %v2468_v15 }
 0xa5b   :  { %2188 = vmatprep.subr.bf16.mxu1 %v2466_v11 }
 0xa5e   :  { %2190 = vmatpush3.bf16.msra.mxu1 %v2600_v14 }
 0xa5f   :  { %2197 = vmatprep.subr.bf16.mxu1 %v2466_v11 }
 0xb2c   :  { %v973_v28 = vpop.f32.mrb[4].mxu1 }
 0xb2d   :  { %v974_v19 = vadd.f32 %v2623_v24, %v973_v28  ;;  %v2098_v30 = vpop.f32.mrb[5].mxu1 }
 0xb2f   :  { %1016 = vrot.lane.b32.xlu1 %v974_v19, %s2469_s4  ;;  %v978_v31 = vrot.slane %v974_v19, 2  ;;  %v1009_v33 = vadd.f32 %v974_v19, %v2636_v32 }
 0xb31   :  { %987 = vrot.lane.b32.xlu0 %v978_v31, %s2469_s4  ;;  %v980_v35 = vadd.f32 %v978_v31, %v2638_v34  ;;  %v1974_v36 = vmul.f32 -1.442695, %v1009_v33 }
 0xb33   :  { %v1973_v37 = vmul.f32 -1.442695, %v980_v35  ;;  %2276 = vpow2.f32 %v1974_v36 }
 0xb35   :  { %2278 = vpow2.f32 %v1973_v37 }
 0xb3d   :  { %v2277_v38 = vpop.eup %2276 }
 0xb3e   :  { %v1013_v40 = vadd.f32 1.0, %v2277_v38 }
 0xb3f   :  { %v2279_v39 = vpop.eup %2278 }
 0xb40   :  { %v984_v41 = vadd.f32 1.0, %v2279_v39  ;;  %2280 = vrcp.f32 %v1013_v40 }
 0xb42   :  { %2282 = vrcp.f32 %v984_v41 }
 0xb4a   :  { %v2281_v42 = vpop.eup %2280 }
 0xb4b   :  { %v1026_v13 = vsub.f32 1.0, %v2281_v42 }
 0xb4c   :  { %v2283_v45 = vpop.eup %2282 }
 0xb4d   :  { %v997_v63 = vsub.f32 1.0, %v2283_v45 }
 0xba1   :  { %v1017_v43 = vpop.permute.xlu1 %1016 }
 0xba2   :  { %v1019_v44 = vmul.f32 %v2281_v42, %v1017_v43 }
 0xba3   :  { %v988_v46 = vpop.permute.xlu0 %987 }
 0xba4   :  { %v990_v47 = vmul.f32 %v2283_v45, %v988_v46  ;;  %1021 = vrot.lane.b32.xlu1 %v1019_v44, %s2471_s21 }
 0xba6   :  { %992 = vrot.lane.b32.xlu0 %v990_v47, %s2471_s21 }
 0xbaa   :  { %1089 = vperm.xlu0 %2231, %v1087_v49  }
 0xbae   :  { %1004 = vrot.lane.b32.xlu0 %v1003_v50, %s2474_s25 }
 0xbb2   :  { %1032 = vrot.lane.b32.xlu0 %v2783_v27, %s2475_s26 }
 0xc16   :  { %v1022_v51 = vpop.permute.xlu1 %1021 }
 0xc17   :  { %v1024_v54 = vadd.f32 %v1022_v51, %v2636_v32 }
 0xc18   :  { %v993_v52 = vpop.permute.xlu0 %992 }
 0xc19   :  { %v995_v53 = vadd.f32 %v993_v52, %v2638_v34 }
 0xc1b   :  { %2284 = vtanh.f32 %v995_v53 }
 0xc1c   :  { %2286 = vtanh.f32 %v1024_v54 }
 0xc25   :  { %v2285_v55 = vpop.eup %2284 }
 0xc26   :  { %999 = vrot.lane.b32.xlu1 %v2285_v55, %s2472_s22  ;;  %v2287_v56 = vpop.eup %2286 }
 0xc29   :  { %v2816_v59 = vpop.permute.xlu0 %1089 }
 0xc2a   :  { %1028 = vrot.lane.b32.xlu1 %v2287_v56, %s2472_s22  ;;  %vm1091_vm7 = vcmp.eq.s32.totalorder %v2816_v59, 1 }
 0xc2d   :  { %v1005_v62 = vpop.permute.xlu0 %1004 }
 0xc2e   :  { %1078 = vperm.xlu1 %2230, %v1076_v57   ;;  %v1007_v3 = vmul.f32 %v2283_v45, %v1005_v62 }
 0xc31   :  { %v1033_v7 = vpop.permute.xlu0 %1032 }
 0xc32   :  { %v1035_v18 = vmul.f32 %v2281_v42, %v1033_v7 }
 0xc98   :  { %v1000_v2 = vpop.permute.xlu1 %999 }
 0xc99   :  { %v1002_v5 = vmul.f32 %v1000_v2, %v997_v63 }
 0xc9b   :  { %v2818_v8 = vadd.f32 %v1007_v3, %v1002_v5 }
 0xc9c   :  { %v1029_v16 = vpop.permute.xlu1 %1028 }
 0xc9d   :  { %v1031_v20 = vmul.f32 %v1029_v16, %v1026_v13  ;;  %v1082_v21 = vrot.slane %v2818_v8, 6 }
 0xc9f   :  { %v2821_v25 = vadd.f32 %v1035_v18, %v1031_v20  ;;  %1083 = vrot.lane.b32.xlu0 %v1082_v21, %s2472_s22 }
 0xca1   :  { %v1092_v29 = vsel %vm1091_vm7, %v2821_v25, %v1033_v7 }
 0xca2   :  { %1094 = vrot.lane.b32.xlu1 %v1092_v29, %s2476_s27 }
 0xcad   :  { %v2828_v26 = vpop.permute.xlu1 %1078 }
 0xcae   :  { %vm1080_vm6 = vcmp.eq.s32.totalorder %v2828_v26, 1 }
 0xd11   :  { %v1084_v28 = vpop.permute.xlu0 %1083 }
 0xd12   :  { %v1086_v19 = vsel %vm1080_vm6, %v1084_v28, %v2783_v27 }
 0xd14   :  { %v1095_v30 = vpop.permute.xlu1 %1094 }
 0xd15   :  { %v1097_v31 = vsel %vm110_vm0, %v1086_v19, %v1095_v30 }
 0xd16   :  { %2108 = vmatmul.mubr.msk.f32.vlgmr.msra.gmra.mrb[6].mxu0 %vm196_vm2, %v1097_v31  ;;  %v1225_v52 = vrot.slane %v1097_v31, 2 }
 0xd17   :  { %2193 = vmatpush3.bf16.msra.mxu0 %v2595_v9  ;;  %2129 = vmatprep.mubr.msk.f32.mxu0 %vm2467_vm1, %v2468_v15 }
 0xd18   :  { %2194 = vmatprep.subr.bf16.mxu0 %v2466_v11 }
 0xd1b   :  { %2196 = vmatpush3.bf16.msra.mxu0 %v2600_v14 }
 0xde9   :  { %v1167_v33 = vpop.f32.mrb[6].mxu0 }
 0xdea   :  { %v1168_v35 = vadd.f32 %v2623_v24, %v1167_v33  ;;  %v2109_v36 = vpop.f32.mrb[7].mxu0 }
 0xdec   :  { %1179 = vrot.lane.b32.xlu1 %v1168_v35, %s2469_s4  ;;  %v1200_v27 = vrot.slane %v1168_v35, 2  ;;  %v1171_v37 = vadd.f32 %v1168_v35, %v2636_v32 }
 0xdee   :  { %1209 = vrot.lane.b32.xlu0 %v1200_v27, %s2469_s4  ;;  %v1202_v38 = vadd.f32 %v1200_v27, %v2638_v34  ;;  %v1976_v39 = vmul.f32 -1.442695, %v1171_v37 }
 0xdf0   :  { %v1977_v40 = vmul.f32 -1.442695, %v1202_v38  ;;  %2288 = vpow2.f32 %v1976_v39 }
 0xdf2   :  { %2290 = vpow2.f32 %v1977_v40 }
 0xdfa   :  { %v2289_v41 = vpop.eup %2288 }
 0xdfb   :  { %v1175_v43 = vadd.f32 1.0, %v2289_v41 }
 0xdfc   :  { %v2291_v42 = vpop.eup %2290 }
 0xdfd   :  { %v1206_v44 = vadd.f32 1.0, %v2291_v42  ;;  %2292 = vrcp.f32 %v1175_v43 }
 0xdff   :  { %2294 = vrcp.f32 %v1206_v44 }
 0xe07   :  { %v2293_v45 = vpop.eup %2292 }
 0xe08   :  { %v1189_v18 = vsub.f32 1.0, %v2293_v45 }
 0xe09   :  { %v2295_v49 = vpop.eup %2294 }
 0xe0a   :  { %v1219_v2 = vsub.f32 1.0, %v2295_v49 }
 0xe5e   :  { %v1180_v46 = vpop.permute.xlu1 %1179 }
 0xe5f   :  { %v1182_v47 = vmul.f32 %v2293_v45, %v1180_v46 }
 0xe60   :  { %v1210_v50 = vpop.permute.xlu0 %1209 }
 0xe61   :  { %v1212_v51 = vmul.f32 %v2295_v49, %v1210_v50  ;;  %1184 = vrot.lane.b32.xlu1 %v1182_v47, %s2471_s21 }
 0xe63   :  { %1214 = vrot.lane.b32.xlu0 %v1212_v51, %s2471_s21 }
 0xe65   :  { %1226 = vrot.lane.b32.xlu1 %v1225_v52, %s2475_s26 }
 0xe69   :  { %1195 = vrot.lane.b32.xlu1 %v1097_v31, %s2474_s25 }
 0xe6d   :  { %1272 = vrot.lane.b32.xlu1 %v1097_v31, %s2472_s22 }
 0xed3   :  { %v1185_v53 = vpop.permute.xlu1 %1184 }
 0xed4   :  { %v1187_v56 = vadd.f32 %v1185_v53, %v2636_v32 }
 0xed5   :  { %v1215_v54 = vpop.permute.xlu0 %1214 }
 0xed6   :  { %v1217_v55 = vadd.f32 %v1215_v54, %v2638_v34 }
 0xed7   :  { %v1227_v63 = vpop.permute.xlu1 %1226 }
 0xed8   :  { %2296 = vtanh.f32 %v1217_v55  ;;  %v1229_v5 = vmul.f32 %v2295_v49, %v1227_v63 }
 0xed9   :  { %2298 = vtanh.f32 %v1187_v56 }
 0xedb   :  { %v1196_v13 = vpop.permute.xlu1 %1195 }
 0xedc   :  { %v1198_v21 = vmul.f32 %v2293_v45, %v1196_v13 }
 0xedf   :  { %v1273_v31 = vpop.permute.xlu1 %1272 }
 0xee2   :  { %v2297_v57 = vpop.eup %2296 }
 0xee3   :  { %1221 = vrot.lane.b32.xlu0 %v2297_v57, %s2472_s22  ;;  %v2299_v62 = vpop.eup %2298 }
 0xee7   :  { %1191 = vrot.lane.b32.xlu0 %v2299_v62, %s2472_s22 }
 0xf55   :  { %v1222_v3 = vpop.permute.xlu0 %1221 }
 0xf56   :  { %v1224_v7 = vmul.f32 %v1222_v3, %v1219_v2 }
 0xf58   :  { %v2855_v16 = vadd.f32 %v1229_v5, %v1224_v7 }
 0xf59   :  { %v1192_v20 = vpop.permute.xlu0 %1191 }
 0xf5a   :  { %v1194_v29 = vmul.f32 %v1192_v20, %v1189_v18  ;;  %v1268_v28 = vrot.slane %v2855_v16, 6 }
 0xf5c   :  { %v2858_v19 = vadd.f32 %v1198_v21, %v1194_v29  ;;  %1269 = vrot.lane.b32.xlu0 %v1268_v28, %s2473_s23 }
 0xf5e   :  { %v1266_v30 = vsel %vm1091_vm7, %v2858_v19, %v1196_v13 }
 0xf60   :  { %1277 = vrot.lane.b32.xlu0 %v1266_v30, %s2472_s22 }
 0xfce   :  { %v1270_v33 = vpop.permute.xlu0 %1269 }
 0xfcf   :  { %v1275_v35 = vsel %vm1080_vm6, %v1270_v33, %v1273_v31  ;;  %vm1841_vm6 = vcmask 58368  }
 0xfd0   :  { %1281 = vrot.lane.b32.xlu1 %v1275_v35, %s2474_s25 }
 0xfd2   :  { %v1278_v36 = vpop.permute.xlu0 %1277 }
0x1042   :  { %v1282_v27 = vpop.permute.xlu1 %1281 }
0x1043   :  { %v2869_v37 = vsel %vm110_vm0, %v1278_v36, %v1282_v27 }
0x1044   :  { %2119 = vmatmul.mubr.msk.f32.vlgmr.msra.gmra.mrb[6].mxu1 %vm196_vm2, %v2869_v37  ;;  %v1415_v53 = vrot.slane %v2869_v37, 4  ;;  %v1384_v54 = vrot.slane %v2869_v37, 6 }
0x1045   :  { %2199 = vmatpush3.bf16.msra.mxu1 %v2595_v9  ;;  %2140 = vmatprep.mubr.msk.f32.mxu1 %vm2467_vm1, %v2468_v15  ;;  %vm436_vm1 = vcmask 130054  }
0x1046   :  { %2200 = vmatprep.subr.bf16.mxu1 %v2466_v11 }
0x1049   :  { %2202 = vmatpush3.bf16.msra.mxu1 %v2600_v14 }
0x1117   :  { %v1354_v59 = vpop.f32.mrb[6].mxu1 }
0x1118   :  { %v1355_v26 = vadd.f32 %v2623_v24, %v1354_v59  ;;  %v2120_v38 = vpop.f32.mrb[7].mxu1 }
0x111a   :  { %v1359_v39 = vrot.slane %v1355_v26, 6  ;;  %v1390_v40 = vrot.slane %v1355_v26, 4 }
0x111c   :  { %1399 = vrot.lane.b32.xlu0 %v1390_v40, %s2469_s4  ;;  %1368 = vrot.lane.b32.xlu1 %v1359_v39, %s2469_s4  ;;  %v1361_v41 = vadd.f32 %v1359_v39, %v2636_v32  ;;  %v1392_v9 = vadd.f32 %v1390_v40, %v2638_v34 }
0x111e   :  { %v1979_v42 = vmul.f32 -1.442695, %v1361_v41  ;;  %v1980_v43 = vmul.f32 -1.442695, %v1392_v9 }
0x1120   :  { %2300 = vpow2.f32 %v1979_v42 }
0x1121   :  { %2302 = vpow2.f32 %v1980_v43 }
0x112a   :  { %v2301_v11 = vpop.eup %2300 }
0x112b   :  { %v2303_v14 = vpop.eup %2302  ;;  %v1365_v44 = vadd.f32 1.0, %v2301_v11 }
0x112c   :  { %v1396_v45 = vadd.f32 1.0, %v2303_v14 }
0x112d   :  { %2304 = vrcp.f32 %v1365_v44 }
0x112e   :  { %2306 = vrcp.f32 %v1396_v45 }
0x1137   :  { %v2305_v46 = vpop.eup %2304 }
0x1138   :  { %v2307_v47 = vpop.eup %2306  ;;  %v1378_v29 = vsub.f32 1.0, %v2305_v46 }
0x1139   :  { %v1409_v5 = vsub.f32 1.0, %v2307_v47 }
0x118e   :  { %v1400_v49 = vpop.permute.xlu0 %1399  ;;  %v1369_v50 = vpop.permute.xlu1 %1368 }
0x118f   :  { %v1402_v51 = vmul.f32 %v2307_v47, %v1400_v49  ;;  %v1371_v52 = vmul.f32 %v2305_v46, %v1369_v50 }
0x1191   :  { %1404 = vrot.lane.b32.xlu0 %v1402_v51, %s2471_s21  ;;  %1373 = vrot.lane.b32.xlu1 %v1371_v52, %s2471_s21 }
0x1195   :  { %1416 = vrot.lane.b32.xlu1 %v1415_v53, %s2475_s26 }
0x1199   :  { %1385 = vrot.lane.b32.xlu1 %v1384_v54, %s2474_s25 }
0x119d   :  { %1470 = vrot.lane.b32.xlu1 %v2869_v37, %s2472_s22 }
0x1203   :  { %v1405_v55 = vpop.permute.xlu0 %1404  ;;  %v1374_v56 = vpop.permute.xlu1 %1373 }
0x1204   :  { %v1407_v57 = vadd.f32 %v1405_v55, %v2638_v34  ;;  %v1376_v62 = vadd.f32 %v1374_v56, %v2636_v32 }
0x1206   :  { %2308 = vtanh.f32 %v1407_v57 }
0x1207   :  { %2310 = vtanh.f32 %v1376_v62  ;;  %v1417_v3 = vpop.permute.xlu1 %1416 }
0x1208   :  { %v1419_v13 = vmul.f32 %v2307_v47, %v1417_v3 }
0x120b   :  { %v1386_v20 = vpop.permute.xlu1 %1385 }
0x120c   :  { %v1388_v30 = vmul.f32 %v2305_v46, %v1386_v20 }
0x120f   :  { %v1471_v27 = vpop.permute.xlu1 %1470 }
0x1210   :  { %v2309_v63 = vpop.eup %2308 }
0x1211   :  { %1411 = vrot.lane.b32.xlu0 %v2309_v63, %s2472_s22  ;;  %v2311_v2 = vpop.eup %2310 }
0x1215   :  { %1380 = vrot.lane.b32.xlu0 %v2311_v2, %s2472_s22 }
0x1283   :  { %v1412_v7 = vpop.permute.xlu0 %1411 }
0x1284   :  { %v1414_v18 = vmul.f32 %v1412_v7, %v1409_v5 }
0x1286   :  { %v2895_v21 = vadd.f32 %v1419_v13, %v1414_v18 }
0x1287   :  { %v1381_v28 = vpop.permute.xlu0 %1380 }
0x1288   :  { %v1383_v31 = vmul.f32 %v1381_v28, %v1378_v29  ;;  %v1466_v33 = vrot.slane %v2895_v21, 4 }
0x128a   :  { %v2898_v35 = vadd.f32 %v1388_v30, %v1383_v31  ;;  %1467 = vrot.lane.b32.xlu0 %v1466_v33, %s2473_s23 }
0x128c   :  { %v1460_v36 = vrot.slane %v2898_v35, 2 }
0x128e   :  { %1461 = vrot.lane.b32.xlu0 %v1460_v36, %s2472_s22 }
0x12fc   :  { %v1468_v59 = vpop.permute.xlu0 %1467 }
0x12fd   :  { %v1473_v26 = vsel %vm878_vm15, %v1468_v59, %v1471_v27 }
0x12fe   :  { %1475 = vrot.lane.b32.xlu1 %v1473_v26, %s2474_s25 }
0x1300   :  { %v1462_v38 = vpop.permute.xlu0 %1461 }
0x1301   :  { %v1464_v39 = vsel %vm889_vm14, %v1462_v38, %v2869_v37 }
0x1370   :  { %v1476_v40 = vpop.permute.xlu1 %1475 }
0x1371   :  { %v2910_v41 = vsel %vm110_vm0, %v1464_v39, %v1476_v40 }
0x1372   :  { %2130 = vmatmul.mubr.msk.f32.vlgmr.msra.gmra.mrb[8].mxu0 %vm196_vm2, %v2910_v41  ;;  %v1609_v55 = vrot.slane %v2910_v41, 6  ;;  %v1578_v56 = vrot.slane %v2910_v41, 4 }
0x1445   :  { %v1548_v9 = vpop.f32.mrb[8].mxu0 }
0x1446   :  { %v1549_v42 = vadd.f32 %v2623_v24, %v1548_v9  ;;  %v2131_v43 = vpop.f32.mrb[9].mxu0 }
0x1448   :  { %v1553_v17 = vrot.slane %v1549_v42, 4  ;;  %v1584_v11 = vrot.slane %v1549_v42, 6 }
0x144a   :  { %1593 = vrot.lane.b32.xlu0 %v1584_v11, %s2469_s4  ;;  %1562 = vrot.lane.b32.xlu1 %v1553_v17, %s2469_s4  ;;  %v1555_v1 = vadd.f32 %v1553_v17, %v2636_v32  ;;  %v1586_v37 = vadd.f32 %v1584_v11, %v2638_v34 }
0x144c   :  { %v1982_v14 = vmul.f32 -1.442695, %v1555_v1  ;;  %v1983_v44 = vmul.f32 -1.442695, %v1586_v37  ;;  %v2340_v37 = vld [vmem:[#allocation8 + $0x20] ss:$0 sm:$0xff] }
0x144e   :  { %2312 = vpow2.f32 %v1982_v14 }
0x144f   :  { %2314 = vpow2.f32 %v1983_v44 }
0x1458   :  { %v2313_v45 = vpop.eup %2312 }
0x1459   :  { %v2315_v46 = vpop.eup %2314  ;;  %v1559_v47 = vadd.f32 1.0, %v2313_v45 }
0x145a   :  { %v1590_v49 = vadd.f32 1.0, %v2315_v46 }
0x145b   :  { %2316 = vrcp.f32 %v1559_v47 }
0x145c   :  { %2318 = vrcp.f32 %v1590_v49 }
0x1465   :  { %v2317_v24 = vpop.eup %2316 }
0x1466   :  { %v2319_v50 = vpop.eup %2318  ;;  %v1572_v31 = vsub.f32 1.0, %v2317_v24 }
0x1467   :  { %v1603_v13 = vsub.f32 1.0, %v2319_v50 }
0x14bc   :  { %v1594_v51 = vpop.permute.xlu0 %1593  ;;  %v1563_v52 = vpop.permute.xlu1 %1562 }
0x14bd   :  { %v1596_v53 = vmul.f32 %v2319_v50, %v1594_v51  ;;  %v1565_v54 = vmul.f32 %v2317_v24, %v1563_v52 }
0x14bf   :  { %1598 = vrot.lane.b32.xlu0 %v1596_v53, %s2471_s21  ;;  %1567 = vrot.lane.b32.xlu1 %v1565_v54, %s2471_s21 }
0x14c3   :  { %1610 = vrot.lane.b32.xlu1 %v1609_v55, %s2475_s26 }
0x14c7   :  { %1579 = vrot.lane.b32.xlu1 %v1578_v56, %s2474_s25 }
0x14cb   :  { %1664 = vrot.lane.b32.xlu1 %v2910_v41, %s2472_s22 }
0x1531   :  { %v1599_v57 = vpop.permute.xlu0 %1598  ;;  %v1568_v62 = vpop.permute.xlu1 %1567 }
0x1532   :  { %v1601_v63 = vadd.f32 %v1599_v57, %v2638_v34  ;;  %v1570_v2 = vadd.f32 %v1568_v62, %v2636_v32  ;;  %v1965_v57 = vld [vmem:[%s3144_s5] ss:$0 sm:$0xff] }
0x1534   :  { %2320 = vtanh.f32 %v1601_v63 }
0x1535   :  { %2322 = vtanh.f32 %v1570_v2  ;;  %v1611_v7 = vpop.permute.xlu1 %1610 }
0x1536   :  { %v1613_v20 = vmul.f32 %v2319_v50, %v1611_v7 }
0x1539   :  { %v1580_v28 = vpop.permute.xlu1 %1579 }
0x153a   :  { %v1582_v36 = vmul.f32 %v2317_v24, %v1580_v28 }
0x153d   :  { %v1665_v39 = vpop.permute.xlu1 %1664 }
0x153e   :  { %v2321_v3 = vpop.eup %2320 }
0x153f   :  { %1605 = vrot.lane.b32.xlu0 %v2321_v3, %s2472_s22  ;;  %v2323_v5 = vpop.eup %2322 }
0x1543   :  { %1574 = vrot.lane.b32.xlu0 %v2323_v5, %s2472_s22 }
0x15b1   :  { %v1606_v18 = vpop.permute.xlu0 %1605 }
0x15b2   :  { %v1608_v29 = vmul.f32 %v1606_v18, %v1603_v13 }
0x15b4   :  { %v2931_v30 = vadd.f32 %v1613_v20, %v1608_v29 }
0x15b5   :  { %v1575_v33 = vpop.permute.xlu0 %1574 }
0x15b6   :  { %v1577_v27 = vmul.f32 %v1575_v33, %v1572_v31  ;;  %v1660_v59 = vrot.slane %v2931_v30, 2 }
0x15b8   :  { %v2934_v26 = vadd.f32 %v1582_v36, %v1577_v27  ;;  %1661 = vrot.lane.b32.xlu0 %v1660_v59, %s2473_s23 }
0x15ba   :  { %v1654_v38 = vrot.slane %v2934_v26, 4 }
0x15bc   :  { %1655 = vrot.lane.b32.xlu0 %v1654_v38, %s2472_s22 }
0x162a   :  { %v1662_v40 = vpop.permute.xlu0 %1661 }
0x162b   :  { %v1667_v9 = vsel %vm670_vm11, %v1662_v40, %v1665_v39  ;;  %vm3147_vm11 = vcmp.gt.s32.totalorder %v2645_v48, 3 }
0x162c   :  { %1669 = vrot.lane.b32.xlu1 %v1667_v9, %s2474_s25  ;;  %vm3148_vm14 = vmmov %vm3147_vm11 }
0x162e   :  { %v1656_v42 = vpop.permute.xlu0 %1655 }
0x162f   :  { %v1658_v43 = vsel %vm681_vm10, %v1656_v42, %v2910_v41  ;;  %vm642_vm10 = vcmask 128004  }
0x169e   :  { %v1670_v17 = vpop.permute.xlu1 %1669 }
0x169f   :  { %v1672_v11 = vsel %vm110_vm0, %v1658_v43, %v1670_v17  ;;  %vm423_vm0 = vcmask 123904  }
0x16a0   :  { %2141 = vmatmul.mubr.msk.f32.vlgmr.msra.gmra.mrb[8].mxu1 %vm196_vm2, %v1672_v11  ;;  %vm629_vm2 = vcmask 125954  }
0x1773   :  { %v1742_v1 = vpop.f32.mrb[8].mxu1 }
0x1774   :  { %v1743_v14 = vadd.f32 %v2340_v37, %v1742_v1  ;;  %v2142_v44 = vpop.f32.mrb[9].mxu1 }
0x1776   :  { %1785 = vrot.lane.b32.xlu1 %v1743_v14, %s2469_s4  ;;  %v1747_v12 = vrot.slane %v1743_v14, 2  ;;  %v1778_v45 = vadd.f32 %v1743_v14, %v2638_v34 }
0x1778   :  { %1756 = vrot.lane.b32.xlu0 %v1747_v12, %s2469_s4  ;;  %v1749_v46 = vadd.f32 %v1747_v12, %v2636_v32  ;;  %v1986_v61 = vmul.f32 -1.442695, %v1778_v45 }
0x177a   :  { %v1985_v41 = vmul.f32 -1.442695, %v1749_v46  ;;  %2324 = vpow2.f32 %v1986_v61 }
0x177c   :  { %2326 = vpow2.f32 %v1985_v41 }
0x1784   :  { %v2325_v47 = vpop.eup %2324 }
0x1785   :  { %v1782_v24 = vadd.f32 1.0, %v2325_v47 }
0x1786   :  { %v2327_v49 = vpop.eup %2326 }
0x1787   :  { %v1753_v50 = vadd.f32 1.0, %v2327_v49  ;;  %2328 = vrcp.f32 %v1782_v24 }
0x1789   :  { %2330 = vrcp.f32 %v1753_v50 }
0x1791   :  { %v2951_v51 = vpop.eup %2328 }
0x1792   :  { %v1795_v38 = vsub.f32 1.0, %v2951_v51 }
0x1793   :  { %v2954_v54 = vpop.eup %2330 }
0x17e8   :  { %v1786_v52 = vpop.permute.xlu1 %1785 }
0x17e9   :  { %v1788_v53 = vmul.f32 %v2951_v51, %v1786_v52 }
0x17ea   :  { %v1757_v55 = vpop.permute.xlu0 %1756 }
0x17eb   :  { %v1759_v56 = vmul.f32 %v2954_v54, %v1757_v55  ;;  %1790 = vrot.lane.b32.xlu1 %v1788_v53, %s2471_s21 }
0x17ed   :  { %1761 = vrot.lane.b32.xlu0 %v1759_v56, %s2471_s21 }
0x17ef   :  { %415 = vrot.lane.b32.xlu1 %v1965_v57, %s2474_s25 }
0x185d   :  { %v1791_v62 = vpop.permute.xlu1 %1790 }
0x185e   :  { %v1793_v20 = vadd.f32 %v1791_v62, %v2638_v34 }
0x185f   :  { %v1762_v3 = vpop.permute.xlu0 %1761 }
0x1860   :  { %2332 = vtanh.f32 %v1793_v20  ;;  %v1764_v36 = vadd.f32 %v1762_v3, %v2636_v32 }
0x1861   :  { %v2963_v63 = vpop.permute.xlu1 %415 }
0x1862   :  { %v418_v2 = vmul.f32 %v2963_v63, %v2665_v6  ;;  %v1772_v6 = vrot.slane %v1672_v11, 2  ;;  %v624_v28 = vmul.f32 %v2712_v4, %v2963_v63  ;;  %v834_v34 = vmul.f32 %v2768_v10, %v2963_v63 }
0x1863   :  { %v1039_v4 = vmul.f32 %v2818_v8, %v2963_v63  ;;  %v1231_v10 = vmul.f32 %v2858_v19, %v2963_v63  ;;  %v1421_v8 = vmul.f32 %v2898_v35, %v2963_v63  ;;  %2334 = vtanh.f32 %v1764_v36 }
0x1864   :  { %420 = vrot.lane.b32.xlu0 %v418_v2, %s2472_s22 }
0x1868   :  { %428 = vrot.lane.b32.xlu0 %v1965_v57, %s2475_s26 }
0x186a   :  { %v2333_v29 = vpop.eup %2332 }
0x186d   :  { %v2335_v27 = vpop.eup %2334 }
0x18d6   :  { %v421_v5 = vpop.permute.xlu0 %420 }
0x18d7   :  { %v424_v7 = vsel %vm423_vm0, %v421_v5, 0.0 }
0x18d8   :  { %425 = vadd.xlane.f32.xlu1 %v424_v7 }
0x18da   :  { %v2970_v13 = vpop.permute.xlu0 %428 }
0x18db   :  { %v431_v18 = vmul.f32 %v2970_v13, %v2661_v0  ;;  %v637_v0 = vmul.f32 %v2702_v58, %v2970_v13  ;;  %v846_v31 = vmul.f32 %v2758_v60, %v2970_v13  ;;  %v1051_v58 = vmul.f32 %v2821_v25, %v2970_v13 }
0x18dc   :  { %v1240_v60 = vmul.f32 %v2855_v16, %v2970_v13  ;;  %v1615_v25 = vmul.f32 %v2934_v26, %v2963_v63  ;;  %v1627_v19 = vmul.f32 %v2931_v30, %v2970_v13  ;;  %v1433_v37 = vmul.f32 %v2895_v21, %v2970_v13 }
0x18dd   :  { %433 = vrot.lane.b32.xlu0 %v431_v18, %s2473_s23 }
0x18e9   :  { %1773 = vrot.lane.b32.xlu1 %v1772_v6, %s2474_s25 }
0x18ed   :  { %1797 = vrot.lane.b32.xlu1 %v2333_v29, %s2472_s22 }
0x18f1   :  { %1801 = vrot.lane.b32.xlu1 %v1672_v11, %s2475_s26 }
0x18f5   :  { %626 = vrot.lane.b32.xlu1 %v624_v28, %s2472_s22 }
0x18f9   :  { %639 = vrot.lane.b32.xlu1 %v637_v0, %s2473_s23 }
0x18fd   :  { %836 = vrot.lane.b32.xlu1 %v834_v34, %s2472_s22 }
0x1901   :  { %848 = vrot.lane.b32.xlu1 %v846_v31, %s2473_s23 }
0x1905   :  { %1041 = vrot.lane.b32.xlu1 %v1039_v4, %s2472_s22 }
0x1909   :  { %1053 = vrot.lane.b32.xlu1 %v1051_v58, %s2473_s23  ;;  %v2341_v58 = vld [vmem:[%s3140_s1] sm:$0x3] }
0x190d   :  { %1233 = vrot.lane.b32.xlu1 %v1231_v10, %s2472_s22 }
0x1911   :  { %1242 = vrot.lane.b32.xlu1 %v1240_v60, %s2473_s23 }
0x1915   :  { %1423 = vrot.lane.b32.xlu1 %v1421_v8, %s2472_s22 }
0x1919   :  { %1617 = vrot.lane.b32.xlu1 %v1615_v25, %s2472_s22 }
0x191d   :  { %1629 = vrot.lane.b32.xlu1 %v1627_v19, %s2473_s23 }
0x194f   :  { %v434_v33 = vpop.permute.xlu0 %433 }
0x1950   :  { %v437_v16 = vsel %vm436_vm1, %v434_v33, 0.0 }
0x1951   :  { %438 = vadd.xlane.f32.xlu0 %v437_v16 }
0x1965   :  { %v3014_v35 = vpop.xlane.xlu1 %425 }
0x1966   :  { %v427_v34 = vsel %vm408_vm4, %v3014_v35, 0.0 }
0x1967   :  { %1768 = vrot.lane.b32.xlu0 %v2335_v27, %s2472_s22 }
0x1969   :  { %v1774_v59 = vpop.permute.xlu1 %1773 }
0x196a   :  { %v1776_v53 = vmul.f32 %v2954_v54, %v1774_v59 }
0x196d   :  { %v1798_v26 = vpop.permute.xlu1 %1797 }
0x196e   :  { %v1800_v39 = vmul.f32 %v1798_v26, %v1795_v38 }
0x1971   :  { %v1802_v30 = vpop.permute.xlu1 %1801 }
0x1972   :  { %v1804_v40 = vmul.f32 %v2951_v51, %v1802_v30  ;;  %v1766_v51 = vsub.f32 1.0, %v2954_v54 }
0x1974   :  { %v1805_v9 = vadd.f32 %v1804_v40, %v1800_v39 }
0x1975   :  { %v627_v42 = vpop.permute.xlu1 %626 }
0x1976   :  { %v630_v1 = vsel %vm629_vm2, %v627_v42, 0.0  ;;  %v1818_v62 = vmul.f32 %v1805_v9, %v2970_v13 }
0x1979   :  { %v640_v43 = vpop.permute.xlu1 %639 }
0x197a   :  { %v643_v2 = vsel %vm642_vm10, %v640_v43, 0.0 }
0x197d   :  { %v837_v17 = vpop.permute.xlu1 %836 }
0x197e   :  { %v839_v45 = vsel %vm642_vm10, %v837_v17, 0.0 }
0x1981   :  { %v849_v32 = vpop.permute.xlu1 %848 }
0x1982   :  { %v851_v11 = vsel %vm629_vm2, %v849_v32, 0.0 }
0x1985   :  { %v1042_v14 = vpop.permute.xlu1 %1041 }
0x1986   :  { %631 = vadd.xlane.f32.xlu0 %v630_v1  ;;  %v1044_v61 = vsel %vm436_vm1, %v1042_v14, 0.0 }
0x1989   :  { %v1054_v44 = vpop.permute.xlu1 %1053 }
0x198a   :  { %v1056_v5 = vsel %vm423_vm0, %v1054_v44, 0.0 }
0x198d   :  { %v1234_v12 = vpop.permute.xlu1 %1233 }
0x198e   :  { %v1236_v47 = vsel %vm423_vm0, %v1234_v12, 0.0 }
0x1991   :  { %v1243_v46 = vpop.permute.xlu1 %1242 }
0x1992   :  { %v1245_v54 = vsel %vm436_vm1, %v1243_v46, 0.0 }
0x1995   :  { %v1424_v41 = vpop.permute.xlu1 %1423 }
0x1996   :  { %v1426_v49 = vsel %vm629_vm2, %v1424_v41, 0.0 }
0x1999   :  { %v1618_v21 = vpop.permute.xlu1 %1617 }
0x199a   :  { %v1620_v24 = vsel %vm642_vm10, %v1618_v21, 0.0 }
0x199c   :  { %1435 = vrot.lane.b32.xlu0 %v1433_v37, %s2473_s23 }
0x199d   :  { %v1630_v18 = vpop.permute.xlu1 %1629 }
0x199e   :  { %v1632_v13 = vsel %vm629_vm2, %v1630_v18, 0.0 }
0x19bb   :  { %840 = vadd.xlane.f32.xlu0 %v839_v45 }
0x19bf   :  { %1045 = vadd.xlane.f32.xlu0 %v1044_v61 }
0x19c3   :  { %1237 = vadd.xlane.f32.xlu0 %v1236_v47 }
0x19c7   :  { %1427 = vadd.xlane.f32.xlu0 %v1426_v49 }
0x19cb   :  { %1621 = vadd.xlane.f32.xlu0 %v1620_v24 }
0x19de   :  { %v439_v50 = vpop.xlane.xlu0 %438 }
0x19df   :  { %v441_v4 = vrot.slane %v439_v50, 6 }
0x19e1   :  { %v443_v60 = vsel %vm409_vm5, %v441_v4, 0.0 }
0x19e2   :  { %v1769_v52 = vpop.permute.xlu0 %1768 }
0x19e3   :  { %v1771_v55 = vmul.f32 %v1769_v52, %v1766_v51 }
0x19e5   :  { %v1777_v56 = vadd.f32 %v1776_v53, %v1771_v55  ;;  %v82_v53 = vlaneseq }
0x19e7   :  { %v1806_v57 = vmul.f32 %v1777_v56, %v2963_v63  ;;  %v3080_v56 = vand.u32 127, %v82_v53 }
0x19e9   :  { %1808 = vrot.lane.b32.xlu1 %v1806_v57, %s2472_s22  ;;  %vm1060_vm15 = vcmp.eq.s32.totalorder %v3080_v56, 3 }
0x19ed   :  { %1820 = vrot.lane.b32.xlu1 %v1818_v62, %s2473_s23 }
0x1a11   :  { %644 = vadd.xlane.f32.xlu1 %v643_v2 }
0x1a13   :  { %v632_v3 = vpop.xlane.xlu0 %631 }
0x1a14   :  { %v634_v8 = vrot.slane %v632_v3, 2 }
0x1a15   :  { %852 = vadd.xlane.f32.xlu1 %v851_v11 }
0x1a16   :  { %v636_v25 = vsel %vm622_vm9, %v634_v8, 0.0 }
0x1a17   :  { %v1436_v7 = vpop.permute.xlu0 %1435 }
0x1a18   :  { %v1438_v63 = vsel %vm642_vm10, %v1436_v7, 0.0 }
0x1a19   :  { %1057 = vadd.xlane.f32.xlu1 %v1056_v5 }
0x1a1d   :  { %1246 = vadd.xlane.f32.xlu1 %v1245_v54 }
0x1a21   :  { %1439 = vadd.xlane.f32.xlu1 %v1438_v63 }
0x1a25   :  { %1633 = vadd.xlane.f32.xlu1 %v1632_v13 }
0x1a48   :  { %v841_v0 = vpop.xlane.xlu0 %840 }
0x1a49   :  { %v843_v31 = vrot.slane %v841_v0, 4 }
0x1a4b   :  { %v845_v10 = vsel %vm832_vm13, %v843_v31, 0.0 }
0x1a4c   :  { %v1046_v19 = vpop.xlane.xlu0 %1045 }
0x1a4d   :  { %v1048_v26 = vrot.slane %v1046_v19, 6 }
0x1a4f   :  { %v1050_v9 = vsel %vm3147_vm11, %v1048_v26, 0.0 }
0x1a50   :  { %v1238_v35 = vpop.xlane.xlu0 %1237 }
0x1a51   :  { %v1239_v17 = vsel %vm1038_vm3, %v1238_v35, 0.0 }
0x1a54   :  { %v1428_v40 = vpop.xlane.xlu0 %1427 }
0x1a55   :  { %v1430_v32 = vrot.slane %v1428_v40, 2 }
0x1a57   :  { %v1432_v44 = vsel %vm833_vm12, %v1430_v32, 0.0 }
0x1a58   :  { %v1622_v1 = vpop.xlane.xlu0 %1621 }
0x1a59   :  { %v1624_v12 = vrot.slane %v1622_v1, 4 }
0x1a5b   :  { %v1809_v20 = vpop.permute.xlu1 %1808  ;;  %v1626_v41 = vsel %vm623_vm8, %v1624_v12, 0.0 }
0x1a5c   :  { %v1811_v6 = vsel %vm436_vm1, %v1809_v20, 0.0 }
0x1a5d   :  { %1812 = vadd.xlane.f32.xlu0 %v1811_v6 }
0x1a5f   :  { %v1821_v29 = vpop.permute.xlu1 %1820 }
0x1a60   :  { %v1823_v28 = vsel %vm423_vm0, %v1821_v29, 0.0  ;;  %vm1936_vm0 = vcmask 254976  }
0x1a61   :  { %1824 = vadd.xlane.f32.xlu1 %v1823_v28 }
0x1a72   :  { %447 = vperm.xlu1 %2230, %v427_v34  }
0x1a73   :  { %85 = vperm.xlu0 %2231, %v2341_v58  }
0x1a76   :  { %861 = vperm.xlu1 %2230, %v845_v10  }
0x1a77   :  { %455 = vperm.xlu0 %2231, %v443_v60  }
0x1a7b   :  { %653 = vperm.xlu0 %2231, %v636_v25  }
0x1a9e   :  { %v645_v33 = vpop.xlane.xlu1 %644 }
0x1a9f   :  { %v647_v16 = vrot.slane %v645_v33, 4 }
0x1aa1   :  { %v649_v36 = vsel %vm623_vm8, %v647_v16, 0.0  ;;  %vm452_vm8 = vcmp.eq.s32.totalorder %v3080_v56, 7 }
0x1aa2   :  { %661 = vperm.xlu0 %2231, %v649_v36   ;;  %v853_v27 = vpop.xlane.xlu1 %852 }
0x1aa3   :  { %v855_v59 = vrot.slane %v853_v27, 2 }
0x1aa5   :  { %v857_v38 = vsel %vm833_vm12, %v855_v59, 0.0  ;;  %vm858_vm12 = vcmp.eq.s32.totalorder %v3080_v56, 2 }
0x1aa6   :  { %869 = vperm.xlu1 %2230, %v857_v38   ;;  %v1058_v30 = vpop.xlane.xlu1 %1057 }
0x1aa7   :  { %v1059_v39 = vsel %vm1038_vm3, %v1058_v30, 0.0  ;;  %vm1068_vm3 = vcmp.eq.s32.totalorder %v3080_v56, 4 }
0x1aa8   :  { %1071 = vperm.xlu0 %2231, %v1059_v39  }
0x1aaa   :  { %1063 = vperm.xlu1 %2230, %v1050_v9   ;;  %v1247_v42 = vpop.xlane.xlu1 %1246 }
0x1aab   :  { %v1249_v43 = vrot.slane %v1247_v42, 6 }
0x1aad   :  { %v1251_v11 = vsel %vm3148_vm14, %v1249_v43, 0.0 }
0x1aae   :  { %1254 = vperm.xlu1 %2230, %v1239_v17   ;;  %1261 = vperm.xlu0 %2231, %v1251_v11   ;;  %v1440_v37 = vpop.xlane.xlu1 %1439 }
0x1aaf   :  { %v1442_v14 = vrot.slane %v1440_v37, 4 }
0x1ab1   :  { %v1444_v45 = vsel %vm832_vm13, %v1442_v14, 0.0  ;;  %vm866_vm13 = vcmp.eq.s32.totalorder %v3080_v56, 5 }
0x1ab2   :  { %1447 = vperm.xlu1 %2230, %v1432_v44   ;;  %1454 = vperm.xlu0 %2231, %v1444_v45   ;;  %v1634_v46 = vpop.xlane.xlu1 %1633 }
0x1ab3   :  { %v1636_v61 = vrot.slane %v1634_v46, 2 }
0x1ab5   :  { %v1638_v47 = vsel %vm622_vm9, %v1636_v61, 0.0  ;;  %vm444_vm9 = vcmp.eq.s32.totalorder %v3080_v56, 0 }
0x1ab6   :  { %1641 = vperm.xlu1 %2230, %v1626_v41   ;;  %1648 = vperm.xlu0 %2231, %v1638_v47  }
0x1aea   :  { %v1813_v49 = vpop.xlane.xlu0 %1812 }
0x1aeb   :  { %v1815_v21 = vrot.slane %v1813_v49, 6 }
0x1aed   :  { %v1817_v24 = vsel %vm409_vm5, %v1815_v21, 0.0  ;;  %vm650_vm5 = vcmp.eq.s32.totalorder %v3080_v56, 1 }
0x1aee   :  { %1829 = vperm.xlu1 %2230, %v1817_v24   ;;  %v1825_v50 = vpop.xlane.xlu1 %1824 }
0x1aef   :  { %v1826_v51 = vsel %vm408_vm4, %v1825_v50, 0.0  ;;  %vm658_vm4 = vcmp.eq.s32.totalorder %v3080_v56, 6 }
0x1af0   :  { %1836 = vperm.xlu0 %2231, %v1826_v51  }
0x1af2   :  { %v3078_v52 = vpop.permute.xlu0 %85  ;;  %v448_v57 = vpop.permute.xlu1 %447 }
0x1af3   :  { %v450_v5 = vsel %vm444_vm9, %v448_v57, 0.0  ;;  %vm87_vm7 = vcmp.lt.s32.totalorder %v3080_v56, %v3078_v52  ;;  %v2481_v52 = vmov 6   ;;  %v2482_v56 = vmov 5  }
0x1af6   :  { %v456_v55 = vpop.permute.xlu0 %455  ;;  %v862_v48 = vpop.permute.xlu1 %861 }
0x1af7   :  { %v458_v2 = vsel %vm452_vm8, %v456_v55, 0.0  ;;  %v864_v6 = vsel %vm858_vm12, %v862_v48, 0.0  ;;  %v1955_v55 = vsel %vm87_vm7, 1.0, %v2468_v15  ;;  %v2480_v15 = vmov 4  }
0x1af8   :  { %v459_v7 = vadd.f32 %v458_v2, %v450_v5  ;;  %v2477_v2 = vmov 1  }
0x1af9   :  { %2232 = vset.pattern.permute.xlu1 %v2477_v2 }
0x1afa   :  { %v654_v62 = vpop.permute.xlu0 %653 }
0x1afb   :  { %v656_v54 = vsel %vm650_vm5, %v654_v62, 0.0 }
0x1afc   :  { %v657_v18 = vadd.f32 %v656_v54, %v459_v7  ;;  %v2478_v7 = vmov 2  }
0x1b21   :  { %v662_v3 = vpop.permute.xlu0 %661 }
0x1b22   :  { %v664_v63 = vsel %vm658_vm4, %v662_v3, 0.0 }
0x1b23   :  { %v665_v20 = vadd.f32 %v664_v63, %v657_v18  ;;  %v2479_v63 = vmov 3   ;;  %v2483_v18 = vmov 7  }
0x1b25   :  { %v870_v13 = vpop.permute.xlu1 %869  ;;  %v865_v29 = vadd.f32 %v864_v6, %v665_v20 }
0x1b26   :  { %v872_v0 = vsel %vm866_vm13, %v870_v13, 0.0 }
0x1b27   :  { %v873_v31 = vadd.f32 %v872_v0, %v865_v29  ;;  %v1072_v4 = vpop.permute.xlu0 %1071 }
0x1b28   :  { %v1074_v60 = vsel %vm1068_vm3, %v1072_v4, 0.0 }
0x1b29   :  { %v1064_v28 = vpop.permute.xlu1 %1063 }
0x1b2a   :  { %v1066_v34 = vsel %vm1060_vm15, %v1064_v28, 0.0 }
0x1b2b   :  { %v1067_v58 = vadd.f32 %v1066_v34, %v873_v31 }
0x1b2d   :  { %v1255_v10 = vpop.permute.xlu1 %1254  ;;  %v1075_v8 = vadd.f32 %v1074_v60, %v1067_v58  ;;  %v1262_v19 = vpop.permute.xlu0 %1261 }
0x1b2e   :  { %v1257_v25 = vsel %vm1068_vm3, %v1255_v10, 0.0  ;;  %v1264_v36 = vsel %vm1060_vm15, %v1262_v19, 0.0 }
0x1b2f   :  { %v1258_v33 = vadd.f32 %v1257_v25, %v1075_v8 }
0x1b31   :  { %v1448_v16 = vpop.permute.xlu1 %1447  ;;  %v1265_v35 = vadd.f32 %v1264_v36, %v1258_v33  ;;  %v1455_v59 = vpop.permute.xlu0 %1454 }
0x1b32   :  { %v1450_v27 = vsel %vm866_vm13, %v1448_v16, 0.0  ;;  %v1457_v30 = vsel %vm858_vm12, %v1455_v59, 0.0 }
0x1b33   :  { %v1451_v26 = vadd.f32 %v1450_v27, %v1265_v35 }
0x1b35   :  { %v1642_v38 = vpop.permute.xlu1 %1641  ;;  %v1458_v39 = vadd.f32 %v1457_v30, %v1451_v26  ;;  %v1649_v9 = vpop.permute.xlu0 %1648 }
0x1b36   :  { %v1644_v40 = vsel %vm658_vm4, %v1642_v38, 0.0  ;;  %v1651_v43 = vsel %vm650_vm5, %v1649_v9, 0.0 }
0x1b37   :  { %v1645_v42 = vadd.f32 %v1644_v40, %v1458_v39 }
0x1b39   :  { %v1652_v17 = vadd.f32 %v1651_v43, %v1645_v42 }
0x1b6d   :  { %v1830_v32 = vpop.permute.xlu1 %1829 }
0x1b6e   :  { %v1832_v11 = vsel %vm452_vm8, %v1830_v32, 0.0 }
0x1b6f   :  { %v1833_v1 = vadd.f32 %v1832_v11, %v1652_v17  ;;  %v1837_v37 = vpop.permute.xlu0 %1836 }
0x1b70   :  { %v1839_v14 = vsel %vm444_vm9, %v1837_v37, 0.0 }
0x1b71   :  { %v1840_v44 = vadd.f32 %v1839_v14, %v1833_v1 }
0x1b73   :  { %v1842_v12 = vsel %vm1841_vm6, %v1840_v44, -inf }
0x1b74   :  { %1843 = vmax.xlane.f32.xlu1 %v1842_v12 }
0x1c01   :  { %v1844_v45 = vpop.xlane.xlu1 %1843 }
0x1c02   :  { %v1845_v46 = vrot.slane %v1844_v45, 4 }
0x1c04   :  { %v1846_v61 = vmax.f32 %v1844_v45, %v1845_v46 }
0x1c06   :  { %v1847_v41 = vrot.slane %v1846_v61, 2 }
0x1c08   :  { %v1848_v47 = vmax.f32 %v1846_v61, %v1847_v41 }
0x1c0a   :  { %v1849_v49 = vrot.slane %v1848_v47, 1 }
0x1c0c   :  { %v1850_v21 = vmax.f32 %v1848_v47, %v1849_v49 }
0x1c0e   :  { %2203 = vpush %v1850_v21 }
0x1c3f   :  { %s2204_s1 = spop %2203 }
0x1c40   :  { %v1852_v24 = vstv %s2204_s1 }
0x1c41   :  { %v1853_v50 = vsub.f32 %v1840_v44, %v1852_v24 }
0x1c43   :  { %v1854_v51 = vmul.f32 1.442695, %v1853_v50 }
0x1c45   :  { %2336 = vpow2.f32 %v1854_v51 }
0x1c4f   :  { %v2337_v53 = vpop.eup %2336 }
0x1c50   :  { %v1856_v57 = vmul.f32 %v2337_v53, %v1955_v55 }
0x1c52   :  { %v1857_v62 = vsel %vm1841_vm6, %v1856_v57, 0.0 }
0x1c53   :  { %1858 = vadd.xlane.f32.xlu0 %v1857_v62 }
0x1ce0   :  { %v1859_v48 = vpop.xlane.xlu0 %1858 }
0x1ce1   :  { %v1860_v3 = vmax.f32 %v1859_v48, 1e-05 }
0x1ce3   :  { %2338 = vrcp.f32 %v1860_v3 }
0x1ced   :  { %v2339_v5 = vpop.eup %2338 }
0x1cee   :  { %v1862_v54 = vmul.f32 %v2339_v5, %v1856_v57 }
0x1cf0   :  { %1871 = vperm.xlu1 %2232, %v1862_v54   ;;  %1865 = vperm.xlu0 %2231, %v1862_v54  }
0x1cf4   :  { %2233 = vset.pattern.permute.xlu1 %v2478_v7  ;;  %2234 = vset.pattern.permute.xlu0 %v2479_v63 }
0x1cf5   :  { %1881 = vperm.xlu1 %2233, %v1862_v54   ;;  %1891 = vperm.xlu0 %2234, %v1862_v54  }
0x1cf9   :  { %2235 = vset.pattern.permute.xlu1 %v2480_v15  ;;  %2237 = vset.pattern.permute.xlu0 %v2481_v52 }
0x1cfa   :  { %1901 = vperm.xlu1 %2235, %v1862_v54   ;;  %1917 = vperm.xlu0 %2237, %v1862_v54  }
0x1cfe   :  { %2236 = vset.pattern.permute.xlu1 %v2482_v56  ;;  %2239 = vset.pattern.permute.xlu0 %v2483_v18 }
0x1cff   :  { %1907 = vperm.xlu1 %2236, %v1862_v54  }
0x1d03   :  { %2238 = vset.pattern.permute.xlu1 %v2483_v18 }
0x1d04   :  { %1927 = vperm.xlu1 %2238, %v1862_v54  }
0x1d6f   :  { %v1872_v13 = vpop.permute.xlu1 %1871  ;;  %v1866_v20 = vpop.permute.xlu0 %1865 }
0x1d70   :  { %v1873_v6 = vrot.slane %v1872_v13, 6  ;;  %v1868_v58 = vmul.f32 %v1866_v20, %v2615_v22 }
0x1d72   :  { %v1875_v29 = vmul.f32 %v1873_v6, %v2615_v22 }
0x1d74   :  { %v1882_v28 = vpop.permute.xlu1 %1881  ;;  %v1892_v0 = vpop.permute.xlu0 %1891  ;;  %v1877_v34 = vrot.slane %v1875_v29, 2 }
0x1d75   :  { %v1883_v31 = vrot.slane %v1882_v28, 4  ;;  %v1893_v4 = vrot.slane %v1892_v0, 2 }
0x1d76   :  { %v1879_v60 = vadd.f32 %v1877_v34, %v1868_v58 }
0x1d77   :  { %v1885_v10 = vmul.f32 %v1883_v31, %v2615_v22  ;;  %v1895_v25 = vmul.f32 %v1893_v4, %v2615_v22 }
0x1d79   :  { %v1887_v8 = vrot.slane %v1885_v10, 4  ;;  %v1902_v19 = vpop.permute.xlu1 %1901  ;;  %v1918_v33 = vpop.permute.xlu0 %1917  ;;  %v1897_v36 = vrot.slane %v1895_v25, 6 }
0x1d7a   :  { %v1919_v35 = vrot.slane %v1918_v33, 4  ;;  %v1904_v38 = vmul.f32 %v1902_v19, %v2617_v23 }
0x1d7b   :  { %v1889_v16 = vadd.f32 %v1887_v8, %v1879_v60 }
0x1d7c   :  { %v1921_v30 = vmul.f32 %v1919_v35, %v2617_v23 }
0x1d7d   :  { %v1899_v59 = vadd.f32 %v1897_v36, %v1889_v16 }
0x1d7e   :  { %v1908_v27 = vpop.permute.xlu1 %1907  ;;  %v1923_v17 = vrot.slane %v1921_v30, 4 }
0x1d7f   :  { %v1909_v26 = vrot.slane %v1908_v27, 6  ;;  %v1905_v40 = vadd.f32 %v1904_v38, %v1899_v59 }
0x1d81   :  { %v1911_v39 = vmul.f32 %v1909_v26, %v2617_v23 }
0x1d83   :  { %v1913_v9 = vrot.slane %v1911_v39, 2  ;;  %v1928_v42 = vpop.permute.xlu1 %1927 }
0x1d84   :  { %v1929_v43 = vrot.slane %v1928_v42, 2 }
0x1d85   :  { %v1915_v22 = vadd.f32 %v1913_v9, %v1905_v40 }
0x1d86   :  { %v1931_v32 = vmul.f32 %v1929_v43, %v2617_v23 }
0x1d87   :  { %v1925_v11 = vadd.f32 %v1923_v17, %v1915_v22 }
0x1d88   :  { %v1933_v1 = vrot.slane %v1931_v32, 6 }
0x1d8a   :  { %v1935_v37 = vadd.f32 %v1933_v1, %v1925_v11 }
0x1d8c   :  { %1937 = vst.msk [vmem:[#allocation10] sm:$0x3] %vm1936_vm0, %v1935_v37 }
0x1d8d   :  { %2441 = shalt.err (!%p2438_p8)
}
0x1d8e   :  { %s2442_s12 = scalar_lea.hbm %s3145_s6, 32 }
0x1d8f   :  { %p2443_p9 = scmp.ne.s32.totalorder %s3145_s6, %s2442_s12  ;;  %p2446_p10 = scmp.lt.u32.totalorder %s2442_s12, %s3145_s6 }
0x1d91   :  { %p2448_p11 = pnand %p2446_p10, %p2443_p9 }
0x1d93   :  { %2451 = shalt.err (!%p2448_p11)
}
0x1d94   :  { %1947 = dma.vmem_to_hbm [thread:$0]  %s1945_s8, 32, %s3145_s6, [#allocation4]  }
0x1d95   :  { %2458 = dma.done.wait [#allocation4], 32  }
0x1d96   :  { %2459 = vsyncadd [#allocation4], 4294967264 }
0x1d97   :  { %1951 = vsyncpa [#allocation3], 1 }
0x1d98   :  { %1952 = vsyncpa [#allocation6], 1 }
0x1d99   :  { %1953 = vsyncpa [#allocation9], 1 }
0x1d9a   :  { %1954 = vsyncpa [#allocation4], 1 }

</bundles_post_ra>
